<compile_context>
chip_gen: v5e
topology: v5e:2x2
jax: 0.10.0
libtpu: 0.0.40
codegen_flags: <defaults>
</compile_context>

<pallas_src>
import functools

import jax
import jax.numpy as jnp
from jax.experimental import pallas as pl
from jax.experimental.pallas import tpu as pltpu


def _round_up(x, m):
    return (x + m - 1) // m * m


# ---------------------------------------------------------------------------
# Pallas kernel: fused  LeakyReLU( (A @ B) + bias )
#   A    : (tm, K)  bf16 tile of im2col patches (M tiled on the grid)
#   B    : (K, N)   bf16 folded weight (conv weight * BatchNorm scale), resident
#   bias : (1, N)   f32 folded bias (conv bias / BatchNorm shift)
# Accumulation on the MXU in f32; epilogue in f32; cast to output dtype.
# ---------------------------------------------------------------------------
def _matmul_bias_lrelu_kernel(a_ref, b_ref, bias_ref, o_ref, *, slope):
    acc = jnp.dot(a_ref[...], b_ref[...], preferred_element_type=jnp.float32)
    y = acc + bias_ref[...]
    if slope != 1.0:
        y = jnp.where(y >= 0, y, slope * y)
    o_ref[...] = y.astype(o_ref.dtype)


def _pick_tm(M):
    """1-2 grid steps per layer: one big tile where M is tiny, two tiles for
    the larger layers so v7x can shard across its two TensorCores."""
    if M % 256 == 0:
        return 256
    if M % 2 == 0 and (M // 2) % 16 == 0:
        return M // 2
    return M


def fused_matmul_bias_lrelu(a, b, bias, slope, out_dtype):
    """a: (M, K) bf16, b: (K, N) bf16, bias: (1, N) f32 -> (M, N) out_dtype."""
    M, K = a.shape
    K2, N = b.shape
    assert K == K2
    tm = _pick_tm(M)
    assert M % tm == 0

    return pl.pallas_call(
        functools.partial(_matmul_bias_lrelu_kernel, slope=slope),
        out_shape=jax.ShapeDtypeStruct((M, N), out_dtype),
        grid=(M // tm,),
        in_specs=[
            pl.BlockSpec((tm, K), lambda i: (i, 0)),
            pl.BlockSpec((K, N), lambda i: (0, 0)),
            pl.BlockSpec((1, N), lambda i: (0, 0)),
        ],
        out_specs=pl.BlockSpec((tm, N), lambda i: (i, 0)),
        compiler_params=pltpu.CompilerParams(dimension_semantics=("parallel",)),
    )(a, b, bias)


# ---------------------------------------------------------------------------
# Conv3d (k=3, pad=1, arbitrary stride) as bf16 im2col + fused Pallas matmul.
# ---------------------------------------------------------------------------
def conv3d_layer(x, layer, out_dtype):
    """x: (N, D, H, W, Cin) bf16 channels-last; layer holds pre-folded params."""
    w = layer["w"]          # (Kb, Nb) bf16, Kb = round_up(27*Cin, 8)
    bias = layer["bias"]    # (1, Nb) f32
    sd, sh, sw = layer["stride"]
    slope = layer["slope"]
    cout = layer["cout"]

    N, D, H, W, Cin = x.shape
    Do = (D - 1) // sd + 1
    Ho = (H - 1) // sh + 1
    Wo = (W - 1) // sw + 1

    xp = jnp.pad(x, ((0, 0), (1, 1), (1, 1), (1, 1), (0, 0)))
    pats = []
    for kd in range(3):
        for kh in range(3):
            for kw in range(3):
                pats.append(
                    xp[
                        :,
                        kd : kd + (Do - 1) * sd + 1 : sd,
                        kh : kh + (Ho - 1) * sh + 1 : sh,
                        kw : kw + (Wo - 1) * sw + 1 : sw,
                        :,
                    ]
                )
    # TODO(synk): the 27-tap im2col is still materialized wrapper-side (now in
    # bf16, half the bytes); a halo-tiled in-kernel tap accumulation would
    # remove this HBM round-trip but needs in-kernel strided gathers/reshapes.
    patches = jnp.stack(pats, axis=-2)                  # (N, Do, Ho, Wo, 27, Cin)
    A = patches.reshape(N * Do * Ho * Wo, 27 * Cin)
    Kb = w.shape[0]
    if Kb != A.shape[1]:                                # layer 0 only: K 27 -> 32
        A = jnp.pad(A, ((0, 0), (0, Kb - A.shape[1])))

    out = fused_matmul_bias_lrelu(A, w, bias, slope, out_dtype)
    Nb = w.shape[1]
    out = out.reshape(N, Do, Ho, Wo, Nb)
    if cout != Nb:                                      # final layer: 8 -> 1
        out = out[..., :cout]
    return out


# ---------------------------------------------------------------------------
# Parameter construction (deterministic, mirrors NLayerDiscriminator3D.__init__)
# BatchNorm (eval-mode running stats) and conv bias are folded into a single
# pre-reshaped bf16 weight matrix and an f32 bias row per layer.
# ---------------------------------------------------------------------------
def make_discriminator_params(key, input_nc=1, ndf=8, n_layers=3):
    BN_EPS = 1e-5
    configs = []
    configs.append(dict(cin=input_nc, cout=ndf, stride=(2, 2, 2),
                        conv_bias=True, bn=False, lrelu=True))
    nf_mult = 1
    for n in range(1, n_layers):
        nf_prev, nf_mult = nf_mult, min(2 ** n, 8)
        stride = (2, 2, 2) if n == 1 else (1, 2, 2)
        configs.append(dict(cin=ndf * nf_prev, cout=ndf * nf_mult, stride=stride,
                            conv_bias=False, bn=True, lrelu=True))
    nf_prev, nf_mult = nf_mult, min(2 ** n_layers, 8)
    configs.append(dict(cin=ndf * nf_prev, cout=ndf * nf_mult, stride=(1, 1, 1),
                        conv_bias=False, bn=True, lrelu=True))
    configs.append(dict(cin=ndf * nf_mult, cout=1, stride=(1, 1, 1),
                        conv_bias=True, bn=False, lrelu=False))

    layers = []
    for cfg in configs:
        key, kw_, kb_, kg_, kbeta_ = jax.random.split(key, 5)
        cin, cout = cfg["cin"], cfg["cout"]
        fan_in = cin * 27
        w = jax.random.normal(kw_, (3, 3, 3, cin, cout), jnp.float32)
        w = w * (1.0 / jnp.sqrt(fan_in))
        if cfg["bn"]:
            gamma = 1.0 + 0.1 * jax.random.normal(kg_, (cout,), jnp.float32)
            beta = 0.1 * jax.random.normal(kbeta_, (cout,), jnp.float32)
            running_mean = jnp.zeros((cout,), jnp.float32)
            running_var = jnp.ones((cout,), jnp.float32)
            scale = gamma / jnp.sqrt(running_var + BN_EPS)
            bias = beta - running_mean * scale
        elif cfg["conv_bias"]:
            scale = jnp.ones((cout,), jnp.float32)
            bias = 0.1 * jax.random.normal(kb_, (cout,), jnp.float32)
        else:
            scale = jnp.ones((cout,), jnp.float32)
            bias = jnp.zeros((cout,), jnp.float32)

        # Fold the per-channel scale into the weight, reshape to matmul form,
        # and statically pad K to a multiple of 8 and tiny N (final layer) to 8.
        K = 27 * cin
        Kb = _round_up(K, 8)
        Nb = cout if cout % 8 == 0 else _round_up(cout, 8)
        w_fold = (w * scale).reshape(K, cout)
        w_mat = jnp.zeros((Kb, Nb), jnp.float32).at[:K, :cout].set(w_fold)
        bias_row = jnp.zeros((1, Nb), jnp.float32).at[0, :cout].set(bias)

        layers.append(dict(w=w_mat.astype(jnp.bfloat16),
                           bias=bias_row,
                           stride=cfg["stride"],
                           slope=0.2 if cfg["lrelu"] else 1.0,
                           cout=cout))
    return layers


def discriminator_forward(x_ncdhw, layers):
    """x_ncdhw: (N, C, D, H, W) f32 -> (N, 1, Do, Ho, Wo) f32 (PyTorch NCDHW)."""
    x = jnp.transpose(x_ncdhw, (0, 2, 3, 4, 1)).astype(jnp.bfloat16)  # -> NDHWC
    for li, layer in enumerate(layers):
        last = li == len(layers) - 1
        x = conv3d_layer(x, layer, jnp.float32 if last else jnp.bfloat16)
    return jnp.transpose(x, (0, 4, 1, 2, 3))  # back to NCDHW


if __name__ == "__main__":
    key = jax.random.PRNGKey(0)
    k_params, k_input = jax.random.split(key)

    # Small, consistent shapes: batch=2, channels=1, depth=8, spatial=16x16.
    INPUT_NC, NDF, N_LAYERS = 1, 8, 3
    x = jax.random.normal(k_input, (2, INPUT_NC, 8, 16, 16), jnp.float32)

    params = make_discriminator_params(k_params, input_nc=INPUT_NC, ndf=NDF,
                                        n_layers=N_LAYERS)

    fwd = jax.jit(lambda inp: discriminator_forward(inp, params))
    out = fwd(x)
    out = jax.block_until_ready(out)

    # Expected output spatial: D 8->4->2->2->2->2, H/W 16->8->4->2->2->2.
    assert out.shape == (2, 1, 2, 2, 2), out.shape
    assert bool(jnp.all(jnp.isfinite(out)))
    print("KERNEL_OK")
</pallas_src>

<mosaic_0001>
module attributes {stable_mosaic.version = 11 : i64} {
  func.func @_matmul_bias_lrelu_kernel(%arg0: i32, %arg1: memref<256x32xbf16, #tpu.memory_space<vmem>>, %arg2: memref<32x8xbf16, #tpu.memory_space<vmem>>, %arg3: memref<1x8xf32, #tpu.memory_space<vmem>>, %arg4: memref<256x8xbf16, #tpu.memory_space<vmem>>) attributes {dimension_semantics = [#tpu.dimension_semantics<parallel>], iteration_bounds = array<i64: 2>, scalar_prefetch = 0 : i64, scratch_operands = 0 : i64, tpu.core_type = #tpu.core_type<tc>, window_params = [{transform_indices = @transform_0, window_bounds = array<i64: 256, 32>}, {pipeline_mode = #tpu.pipeline_mode<synchronous>, transform_indices = @transform_1, window_bounds = array<i64: 32, 8>}, {pipeline_mode = #tpu.pipeline_mode<synchronous>, transform_indices = @transform_2, window_bounds = array<i64: 1, 8>}, {transform_indices = @transform_3, window_bounds = array<i64: 256, 8>}]} {
    %c0 = arith.constant 0 : index
    %c0_0 = arith.constant 0 : index
    %0 = vector.load %arg1[%c0, %c0_0] : memref<256x32xbf16, #tpu.memory_space<vmem>>, vector<256x32xbf16>
    %c0_1 = arith.constant 0 : index
    %c0_2 = arith.constant 0 : index
    %1 = vector.load %arg2[%c0_1, %c0_2] : memref<32x8xbf16, #tpu.memory_space<vmem>>, vector<32x8xbf16>
    %cst = arith.constant dense<0.000000e+00> : vector<256x8xf32>
    %2 = tpu.matmul %0, %1, %cst {dimension_numbers = #tpu.dot_dimension_numbers<[1], [0], [0], [1], [0, 0, 1, 1], [], []>} : vector<256x32xbf16>, vector<32x8xbf16>, vector<256x8xf32> -> vector<256x8xf32>
    %c0_3 = arith.constant 0 : index
    %c0_4 = arith.constant 0 : index
    %3 = vector.load %arg3[%c0_3, %c0_4] : memref<1x8xf32, #tpu.memory_space<vmem>>, vector<1x8xf32>
    %4 = vector.broadcast %3 : vector<1x8xf32> to vector<256x8xf32>
    %5 = arith.addf %2, %4 : vector<256x8xf32>
    %cst_5 = arith.constant 0.000000e+00 : f32
    %6 = vector.broadcast %cst_5 : f32 to vector<256x8xf32>
    %7 = arith.cmpf oge, %5, %6 : vector<256x8xf32>
    %cst_6 = arith.constant 2.000000e-01 : f32
    %8 = vector.broadcast %cst_6 : f32 to vector<256x8xf32>
    %9 = arith.mulf %8, %5 : vector<256x8xf32>
    %10 = arith.select %7, %5, %9 : vector<256x8xi1>, vector<256x8xf32>
    %11 = arith.truncf %10 : vector<256x8xf32> to vector<256x8xbf16>
    %c0_7 = arith.constant 0 : index
    %c0_8 = arith.constant 0 : index
    %12 = vector.load %arg4[%c0_7, %c0_8] : memref<256x8xbf16, #tpu.memory_space<vmem>>, vector<256x8xbf16>
    tpu.vector_store %arg4[%c0_7, %c0_8], %11 {strides = array<i32>} : memref<256x8xbf16, #tpu.memory_space<vmem>>, vector<256x8xbf16>,
    return
  }
  func.func @transform_0(%arg0: i32) -> (i32, i32) {
    %c0_i32 = arith.constant 0 : i32
    %c0_i32_0 = arith.constant 0 : i32
    return %arg0, %c0_i32 : i32, i32
  }
  func.func @transform_1(%arg0: i32) -> (i32, i32) {
    %c0_i32 = arith.constant 0 : i32
    %c0_i32_0 = arith.constant 0 : i32
    %c0_i32_1 = arith.constant 0 : i32
    return %c0_i32, %c0_i32_0 : i32, i32
  }
  func.func @transform_2(%arg0: i32) -> (i32, i32) {
    %c0_i32 = arith.constant 0 : i32
    %c0_i32_0 = arith.constant 0 : i32
    %c0_i32_1 = arith.constant 0 : i32
    return %c0_i32, %c0_i32_0 : i32, i32
  }
  func.func @transform_3(%arg0: i32) -> (i32, i32) {
    %c0_i32 = arith.constant 0 : i32
    %c0_i32_0 = arith.constant 0 : i32
    return %arg0, %c0_i32 : i32, i32
  }
}

module attributes {stable_mosaic.version = 11 : i64} {
  func.func @_matmul_bias_lrelu_kernel(%arg0: i32, %arg1: memref<32x216xbf16, #tpu.memory_space<vmem>>, %arg2: memref<216x16xbf16, #tpu.memory_space<vmem>>, %arg3: memref<1x16xf32, #tpu.memory_space<vmem>>, %arg4: memref<32x16xbf16, #tpu.memory_space<vmem>>) attributes {dimension_semantics = [#tpu.dimension_semantics<parallel>], iteration_bounds = array<i64: 2>, scalar_prefetch = 0 : i64, scratch_operands = 0 : i64, tpu.core_type = #tpu.core_type<tc>, window_params = [{transform_indices = @transform_0, window_bounds = array<i64: 32, 216>}, {pipeline_mode = #tpu.pipeline_mode<synchronous>, transform_indices = @transform_1, window_bounds = array<i64: 216, 16>}, {pipeline_mode = #tpu.pipeline_mode<synchronous>, transform_indices = @transform_2, window_bounds = array<i64: 1, 16>}, {transform_indices = @transform_3, window_bounds = array<i64: 32, 16>}]} {
    %c0 = arith.constant 0 : index
    %c0_0 = arith.constant 0 : index
    %0 = vector.load %arg1[%c0, %c0_0] : memref<32x216xbf16, #tpu.memory_space<vmem>>, vector<32x216xbf16>
    %c0_1 = arith.constant 0 : index
    %c0_2 = arith.constant 0 : index
    %1 = vector.load %arg2[%c0_1, %c0_2] : memref<216x16xbf16, #tpu.memory_space<vmem>>, vector<216x16xbf16>
    %cst = arith.constant dense<0.000000e+00> : vector<32x16xf32>
    %2 = tpu.matmul %0, %1, %cst {dimension_numbers = #tpu.dot_dimension_numbers<[1], [0], [0], [1], [0, 0, 1, 1], [], []>} : vector<32x216xbf16>, vector<216x16xbf16>, vector<32x16xf32> -> vector<32x16xf32>
    %c0_3 = arith.constant 0 : index
    %c0_4 = arith.constant 0 : index
    %3 = vector.load %arg3[%c0_3, %c0_4] : memref<1x16xf32, #tpu.memory_space<vmem>>, vector<1x16xf32>
    %4 = vector.broadcast %3 : vector<1x16xf32> to vector<32x16xf32>
    %5 = arith.addf %2, %4 : vector<32x16xf32>
    %cst_5 = arith.constant 0.000000e+00 : f32
    %6 = vector.broadcast %cst_5 : f32 to vector<32x16xf32>
    %7 = arith.cmpf oge, %5, %6 : vector<32x16xf32>
    %cst_6 = arith.constant 2.000000e-01 : f32
    %8 = vector.broadcast %cst_6 : f32 to vector<32x16xf32>
    %9 = arith.mulf %8, %5 : vector<32x16xf32>
    %10 = arith.select %7, %5, %9 : vector<32x16xi1>, vector<32x16xf32>
    %11 = arith.truncf %10 : vector<32x16xf32> to vector<32x16xbf16>
    %c0_7 = arith.constant 0 : index
    %c0_8 = arith.constant 0 : index
    %12 = vector.load %arg4[%c0_7, %c0_8] : memref<32x16xbf16, #tpu.memory_space<vmem>>, vector<32x16xbf16>
    tpu.vector_store %arg4[%c0_7, %c0_8], %11 {strides = array<i32>} : memref<32x16xbf16, #tpu.memory_space<vmem>>, vector<32x16xbf16>,
    return
  }
  func.func @transform_0(%arg0: i32) -> (i32, i32) {
    %c0_i32 = arith.constant 0 : i32
    %c0_i32_0 = arith.constant 0 : i32
    return %arg0, %c0_i32 : i32, i32
  }
  func.func @transform_1(%arg0: i32) -> (i32, i32) {
    %c0_i32 = arith.constant 0 : i32
    %c0_i32_0 = arith.constant 0 : i32
    %c0_i32_1 = arith.constant 0 : i32
    return %c0_i32, %c0_i32_0 : i32, i32
  }
  func.func @transform_2(%arg0: i32) -> (i32, i32) {
    %c0_i32 = arith.constant 0 : i32
    %c0_i32_0 = arith.constant 0 : i32
    %c0_i32_1 = arith.constant 0 : i32
    return %c0_i32, %c0_i32_0 : i32, i32
  }
  func.func @transform_3(%arg0: i32) -> (i32, i32) {
    %c0_i32 = arith.constant 0 : i32
    %c0_i32_0 = arith.constant 0 : i32
    return %arg0, %c0_i32 : i32, i32
  }
}

module attributes {stable_mosaic.version = 11 : i64} {
  func.func @_matmul_bias_lrelu_kernel(%arg0: i32, %arg1: memref<16x432xbf16, #tpu.memory_space<vmem>>, %arg2: memref<432x32xbf16, #tpu.memory_space<vmem>>, %arg3: memref<1x32xf32, #tpu.memory_space<vmem>>, %arg4: memref<16x32xbf16, #tpu.memory_space<vmem>>) attributes {dimension_semantics = [#tpu.dimension_semantics<parallel>], iteration_bounds = array<i64: 1>, scalar_prefetch = 0 : i64, scratch_operands = 0 : i64, tpu.core_type = #tpu.core_type<tc>, window_params = [{transform_indices = @transform_0, window_bounds = array<i64: 16, 432>}, {pipeline_mode = #tpu.pipeline_mode<synchronous>, transform_indices = @transform_1, window_bounds = array<i64: 432, 32>}, {pipeline_mode = #tpu.pipeline_mode<synchronous>, transform_indices = @transform_2, window_bounds = array<i64: 1, 32>}, {transform_indices = @transform_3, window_bounds = array<i64: 16, 32>}]} {
    %c0 = arith.constant 0 : index
    %c0_0 = arith.constant 0 : index
    %0 = vector.load %arg1[%c0, %c0_0] : memref<16x432xbf16, #tpu.memory_space<vmem>>, vector<16x432xbf16>
    %c0_1 = arith.constant 0 : index
    %c0_2 = arith.constant 0 : index
    %1 = vector.load %arg2[%c0_1, %c0_2] : memref<432x32xbf16, #tpu.memory_space<vmem>>, vector<432x32xbf16>
    %cst = arith.constant dense<0.000000e+00> : vector<16x32xf32>
    %2 = tpu.matmul %0, %1, %cst {dimension_numbers = #tpu.dot_dimension_numbers<[1], [0], [0], [1], [0, 0, 1, 1], [], []>} : vector<16x432xbf16>, vector<432x32xbf16>, vector<16x32xf32> -> vector<16x32xf32>
    %c0_3 = arith.constant 0 : index
    %c0_4 = arith.constant 0 : index
    %3 = vector.load %arg3[%c0_3, %c0_4] : memref<1x32xf32, #tpu.memory_space<vmem>>, vector<1x32xf32>
    %4 = vector.broadcast %3 : vector<1x32xf32> to vector<16x32xf32>
    %5 = arith.addf %2, %4 : vector<16x32xf32>
    %cst_5 = arith.constant 0.000000e+00 : f32
    %6 = vector.broadcast %cst_5 : f32 to vector<16x32xf32>
    %7 = arith.cmpf oge, %5, %6 : vector<16x32xf32>
    %cst_6 = arith.constant 2.000000e-01 : f32
    %8 = vector.broadcast %cst_6 : f32 to vector<16x32xf32>
    %9 = arith.mulf %8, %5 : vector<16x32xf32>
    %10 = arith.select %7, %5, %9 : vector<16x32xi1>, vector<16x32xf32>
    %11 = arith.truncf %10 : vector<16x32xf32> to vector<16x32xbf16>
    %c0_7 = arith.constant 0 : index
    %c0_8 = arith.constant 0 : index
    %12 = vector.load %arg4[%c0_7, %c0_8] : memref<16x32xbf16, #tpu.memory_space<vmem>>, vector<16x32xbf16>
    tpu.vector_store %arg4[%c0_7, %c0_8], %11 {strides = array<i32>} : memref<16x32xbf16, #tpu.memory_space<vmem>>, vector<16x32xbf16>,
    return
  }
  func.func @transform_0(%arg0: i32) -> (i32, i32) {
    %c0_i32 = arith.constant 0 : i32
    %c0_i32_0 = arith.constant 0 : i32
    return %arg0, %c0_i32 : i32, i32
  }
  func.func @transform_1(%arg0: i32) -> (i32, i32) {
    %c0_i32 = arith.constant 0 : i32
    %c0_i32_0 = arith.constant 0 : i32
    %c0_i32_1 = arith.constant 0 : i32
    return %c0_i32, %c0_i32_0 : i32, i32
  }
  func.func @transform_2(%arg0: i32) -> (i32, i32) {
    %c0_i32 = arith.constant 0 : i32
    %c0_i32_0 = arith.constant 0 : i32
    %c0_i32_1 = arith.constant 0 : i32
    return %c0_i32, %c0_i32_0 : i32, i32
  }
  func.func @transform_3(%arg0: i32) -> (i32, i32) {
    %c0_i32 = arith.constant 0 : i32
    %c0_i32_0 = arith.constant 0 : i32
    return %arg0, %c0_i32 : i32, i32
  }
}

module attributes {stable_mosaic.version = 11 : i64} {
  func.func @_matmul_bias_lrelu_kernel(%arg0: i32, %arg1: memref<16x864xbf16, #tpu.memory_space<vmem>>, %arg2: memref<864x64xbf16, #tpu.memory_space<vmem>>, %arg3: memref<1x64xf32, #tpu.memory_space<vmem>>, %arg4: memref<16x64xbf16, #tpu.memory_space<vmem>>) attributes {dimension_semantics = [#tpu.dimension_semantics<parallel>], iteration_bounds = array<i64: 1>, scalar_prefetch = 0 : i64, scratch_operands = 0 : i64, tpu.core_type = #tpu.core_type<tc>, window_params = [{transform_indices = @transform_0, window_bounds = array<i64: 16, 864>}, {pipeline_mode = #tpu.pipeline_mode<synchronous>, transform_indices = @transform_1, window_bounds = array<i64: 864, 64>}, {pipeline_mode = #tpu.pipeline_mode<synchronous>, transform_indices = @transform_2, window_bounds = array<i64: 1, 64>}, {transform_indices = @transform_3, window_bounds = array<i64: 16, 64>}]} {
    %c0 = arith.constant 0 : index
    %c0_0 = arith.constant 0 : index
    %0 = vector.load %arg1[%c0, %c0_0] : memref<16x864xbf16, #tpu.memory_space<vmem>>, vector<16x864xbf16>
    %c0_1 = arith.constant 0 : index
    %c0_2 = arith.constant 0 : index
    %1 = vector.load %arg2[%c0_1, %c0_2] : memref<864x64xbf16, #tpu.memory_space<vmem>>, vector<864x64xbf16>
    %cst = arith.constant dense<0.000000e+00> : vector<16x64xf32>
    %2 = tpu.matmul %0, %1, %cst {dimension_numbers = #tpu.dot_dimension_numbers<[1], [0], [0], [1], [0, 0, 1, 1], [], []>} : vector<16x864xbf16>, vector<864x64xbf16>, vector<16x64xf32> -> vector<16x64xf32>
    %c0_3 = arith.constant 0 : index
    %c0_4 = arith.constant 0 : index
    %3 = vector.load %arg3[%c0_3, %c0_4] : memref<1x64xf32, #tpu.memory_space<vmem>>, vector<1x64xf32>
    %4 = vector.broadcast %3 : vector<1x64xf32> to vector<16x64xf32>
    %5 = arith.addf %2, %4 : vector<16x64xf32>
    %cst_5 = arith.constant 0.000000e+00 : f32
    %6 = vector.broadcast %cst_5 : f32 to vector<16x64xf32>
    %7 = arith.cmpf oge, %5, %6 : vector<16x64xf32>
    %cst_6 = arith.constant 2.000000e-01 : f32
    %8 = vector.broadcast %cst_6 : f32 to vector<16x64xf32>
    %9 = arith.mulf %8, %5 : vector<16x64xf32>
    %10 = arith.select %7, %5, %9 : vector<16x64xi1>, vector<16x64xf32>
    %11 = arith.truncf %10 : vector<16x64xf32> to vector<16x64xbf16>
    %c0_7 = arith.constant 0 : index
    %c0_8 = arith.constant 0 : index
    %12 = vector.load %arg4[%c0_7, %c0_8] : memref<16x64xbf16, #tpu.memory_space<vmem>>, vector<16x64xbf16>
    tpu.vector_store %arg4[%c0_7, %c0_8], %11 {strides = array<i32>} : memref<16x64xbf16, #tpu.memory_space<vmem>>, vector<16x64xbf16>,
    return
  }
  func.func @transform_0(%arg0: i32) -> (i32, i32) {
    %c0_i32 = arith.constant 0 : i32
    %c0_i32_0 = arith.constant 0 : i32
    return %arg0, %c0_i32 : i32, i32
  }
  func.func @transform_1(%arg0: i32) -> (i32, i32) {
    %c0_i32 = arith.constant 0 : i32
    %c0_i32_0 = arith.constant 0 : i32
    %c0_i32_1 = arith.constant 0 : i32
    return %c0_i32, %c0_i32_0 : i32, i32
  }
  func.func @transform_2(%arg0: i32) -> (i32, i32) {
    %c0_i32 = arith.constant 0 : i32
    %c0_i32_0 = arith.constant 0 : i32
    %c0_i32_1 = arith.constant 0 : i32
    return %c0_i32, %c0_i32_0 : i32, i32
  }
  func.func @transform_3(%arg0: i32) -> (i32, i32) {
    %c0_i32 = arith.constant 0 : i32
    %c0_i32_0 = arith.constant 0 : i32
    return %arg0, %c0_i32 : i32, i32
  }
}

module attributes {stable_mosaic.version = 11 : i64} {
  func.func @_matmul_bias_lrelu_kernel(%arg0: i32, %arg1: memref<16x1728xbf16, #tpu.memory_space<vmem>>, %arg2: memref<1728x8xbf16, #tpu.memory_space<vmem>>, %arg3: memref<1x8xf32, #tpu.memory_space<vmem>>, %arg4: memref<16x8xf32, #tpu.memory_space<vmem>>) attributes {dimension_semantics = [#tpu.dimension_semantics<parallel>], iteration_bounds = array<i64: 1>, scalar_prefetch = 0 : i64, scratch_operands = 0 : i64, tpu.core_type = #tpu.core_type<tc>, window_params = [{transform_indices = @transform_0, window_bounds = array<i64: 16, 1728>}, {pipeline_mode = #tpu.pipeline_mode<synchronous>, transform_indices = @transform_1, window_bounds = array<i64: 1728, 8>}, {pipeline_mode = #tpu.pipeline_mode<synchronous>, transform_indices = @transform_2, window_bounds = array<i64: 1, 8>}, {transform_indices = @transform_3, window_bounds = array<i64: 16, 8>}]} {
    %c0 = arith.constant 0 : index
    %c0_0 = arith.constant 0 : index
    %0 = vector.load %arg1[%c0, %c0_0] : memref<16x1728xbf16, #tpu.memory_space<vmem>>, vector<16x1728xbf16>
    %c0_1 = arith.constant 0 : index
    %c0_2 = arith.constant 0 : index
    %1 = vector.load %arg2[%c0_1, %c0_2] : memref<1728x8xbf16, #tpu.memory_space<vmem>>, vector<1728x8xbf16>
    %cst = arith.constant dense<0.000000e+00> : vector<16x8xf32>
    %2 = tpu.matmul %0, %1, %cst {dimension_numbers = #tpu.dot_dimension_numbers<[1], [0], [0], [1], [0, 0, 1, 1], [], []>} : vector<16x1728xbf16>, vector<1728x8xbf16>, vector<16x8xf32> -> vector<16x8xf32>
    %c0_3 = arith.constant 0 : index
    %c0_4 = arith.constant 0 : index
    %3 = vector.load %arg3[%c0_3, %c0_4] : memref<1x8xf32, #tpu.memory_space<vmem>>, vector<1x8xf32>
    %4 = vector.broadcast %3 : vector<1x8xf32> to vector<16x8xf32>
    %5 = arith.addf %2, %4 : vector<16x8xf32>
    %c0_5 = arith.constant 0 : index
    %c0_6 = arith.constant 0 : index
    %6 = vector.load %arg4[%c0_5, %c0_6] : memref<16x8xf32, #tpu.memory_space<vmem>>, vector<16x8xf32>
    tpu.vector_store %arg4[%c0_5, %c0_6], %5 {strides = array<i32>} : memref<16x8xf32, #tpu.memory_space<vmem>>, vector<16x8xf32>,
    return
  }
  func.func @transform_0(%arg0: i32) -> (i32, i32) {
    %c0_i32 = arith.constant 0 : i32
    %c0_i32_0 = arith.constant 0 : i32
    return %arg0, %c0_i32 : i32, i32
  }
  func.func @transform_1(%arg0: i32) -> (i32, i32) {
    %c0_i32 = arith.constant 0 : i32
    %c0_i32_0 = arith.constant 0 : i32
    %c0_i32_1 = arith.constant 0 : i32
    return %c0_i32, %c0_i32_0 : i32, i32
  }
  func.func @transform_2(%arg0: i32) -> (i32, i32) {
    %c0_i32 = arith.constant 0 : i32
    %c0_i32_0 = arith.constant 0 : i32
    %c0_i32_1 = arith.constant 0 : i32
    return %c0_i32, %c0_i32_0 : i32, i32
  }
  func.func @transform_3(%arg0: i32) -> (i32, i32) {
    %c0_i32 = arith.constant 0 : i32
    %c0_i32_0 = arith.constant 0 : i32
    return %arg0, %c0_i32 : i32, i32
  }
}

</mosaic_0001>

<bundles_post_ra>
// kernel: _lambda_.5
= control target key start
LH: loop header
LB: loop body
LE: loop exit
PB: predicated region body
PF: predicated region fallthrough
CT: control target
= control target key end

     0   :  { %s822_s12 = smov 0   ;;  %s989_s0 = inlined_call_operand.vmem [shape: bf16[512,32], index: 0, kind: input, shape index: {}]   ;;  %s990_s1 = inlined_call_operand.vmem [shape: bf16[32,8], index: 1, kind: input, shape index: {}]   ;;  %s991_s2 = inlined_call_operand.vmem [shape: f32[1,8], index: 2, kind: input, shape index: {}]   ;;  %s992_s3 = inlined_call_operand.vmem [shape: bf16[512,8], index: 3, kind: output, shape index: {}]  }
   0x1 LB: > { %s662_s13 = sadd.s32 4294967295, %s800_s12   ;;  %p666_p0 = scmp.ge.s32.totalorder %s800_s12, 1  ;;  %s800_s12 = sphi %s822_s12, %s13_s12  }
   0x2   : > { %p138_p1 = scmp.lt.s32.totalorder %s800_s12, 3 }
   0x4   : > { %p139_p2 = pnand %p666_p0, %p138_p1 }
   0x5   : > { %s667_s16 = sshll.u32 (!%p139_p2), %s662_s13, 5 }
   0x6   : > { %142 = sbr.rel (%p139_p2) target bundleno = 217 (0xd9), region = 32  ;;  %p163_p3 = scmp.lt.s32.totalorder (!%p139_p2), %s667_s16, 63 }
   0xb   : > { %v778_v0 = vld [vmem:[%s990_s1 + $0x8] sm:$0xff]  ;;  %v777_v1 = vld [vmem:[%s990_s1] sm:$0xff]  ;;  %s994_s16 = smov (!%p163_p3, %s667_s16), 63  ;;  %vm307_vm0 = vcmask 261120   ;;  %vm573_vm3 = vcmask 60416  }
   0xc   : > { %362 = vmatpush.bf16.msra.mxu0 %v778_v0  ;;  %779 = vmatpush.bf16.msra.mxu1 %v778_v0  ;;  %s668_s19 = sshll.u32 %s994_s16, 2  ;;  %v881_v18 = vld [vmem:[%s991_s2] ss:$0 sm:$0xff] }
   0xd   : > { %780 = vmatpush.bf16.msra.mxu2 %v778_v0  ;;  %781 = vmatpush.bf16.msra.mxu3 %v778_v0  ;;  %s844_s22 = scalar_lea.vmem %s989_s0, %s668_s19  ;;  %s890_s27 = scalar_lea.vmem %s992_s3, %s668_s19 }
   0xe   : > { %v761_v2 = vld [vmem:[%s844_s22] sm:$0xff]  ;;  %v762_v6 = vld [vmem:[%s844_s22 + $0x8] sm:$0xff]  ;;  %v763_v10 = vld [vmem:[%s844_s22 + $0x10] sm:$0xff] }
   0xf   : > { %v765_v3 = vld [vmem:[%s844_s22 + $0x20] sm:$0xff]  ;;  %v766_v7 = vld [vmem:[%s844_s22 + $0x28] sm:$0xff]  ;;  %v767_v11 = vld [vmem:[%s844_s22 + $0x30] sm:$0xff] }
  0x10   : > { %363 = vmatpush.bf16.msra.mxu0 %v777_v1  ;;  %782 = vmatpush.bf16.msra.mxu1 %v777_v1  ;;  %v769_v4 = vld [vmem:[%s844_s22 + $0x40] sm:$0xff]  ;;  %v770_v8 = vld [vmem:[%s844_s22 + $0x48] sm:$0xff]  ;;  %v771_v12 = vld [vmem:[%s844_s22 + $0x50] sm:$0xff] }
  0x11   : > { %783 = vmatpush.bf16.msra.mxu2 %v777_v1  ;;  %784 = vmatpush.bf16.msra.mxu3 %v777_v1  ;;  %v773_v5 = vld [vmem:[%s844_s22 + $0x60] sm:$0xff]  ;;  %v774_v9 = vld [vmem:[%s844_s22 + $0x68] sm:$0xff]  ;;  %v775_v13 = vld [vmem:[%s844_s22 + $0x70] sm:$0xff] }
  0x12   : > { %v764_v14 = vld [vmem:[%s844_s22 + $0x18] sm:$0xff] }
  0x13   : > { %743 = vmatmul.msk.bf16.vlgmr.msra.gmra.mxu0 %vm307_vm0, %v761_v2  ;;  %747 = vmatmul.msk.bf16.vlgmr.msra.gmra.mxu1 %vm307_vm0, %v765_v3  ;;  %v768_v15 = vld [vmem:[%s844_s22 + $0x38] sm:$0xff] }
  0x14   : > { %751 = vmatmul.msk.bf16.vlgmr.msra.gmra.mxu2 %vm307_vm0, %v769_v4  ;;  %755 = vmatmul.msk.bf16.vlgmr.msra.gmra.mxu3 %vm307_vm0, %v773_v5  ;;  %v772_v16 = vld [vmem:[%s844_s22 + $0x58] sm:$0xff] }
  0x15   : > { %v776_v17 = vld [vmem:[%s844_s22 + $0x78] sm:$0xff] }
  0x23   : > { %744 = vmatmul.msk.bf16.gmra.mxu0 %vm307_vm0, %v762_v6  ;;  %748 = vmatmul.msk.bf16.gmra.mxu1 %vm307_vm0, %v766_v7 }
  0x24   : > { %752 = vmatmul.msk.bf16.gmra.mxu2 %vm307_vm0, %v770_v8  ;;  %756 = vmatmul.msk.bf16.gmra.mxu3 %vm307_vm0, %v774_v9 }
  0x33   : > { %745 = vmatmul.msk.bf16.gmra.mxu0 %vm307_vm0, %v763_v10  ;;  %749 = vmatmul.msk.bf16.gmra.mxu1 %vm307_vm0, %v767_v11 }
  0x34   : > { %753 = vmatmul.msk.bf16.gmra.mxu2 %vm307_vm0, %v771_v12  ;;  %757 = vmatmul.msk.bf16.gmra.mxu3 %vm307_vm0, %v775_v13 }
  0x43   : > { %746 = vmatmul.msk.bf16.gmra.mxu0 %vm307_vm0, %v764_v14  ;;  %750 = vmatmul.msk.bf16.gmra.mxu1 %vm307_vm0, %v768_v15 }
  0x44   : > { %754 = vmatmul.msk.bf16.gmra.mxu2 %vm307_vm0, %v772_v16  ;;  %758 = vmatmul.msk.bf16.gmra.mxu3 %vm307_vm0, %v776_v17 }
  0x90   : > { %v365_v19 = vpop.f32.mrf.mxu0  ;;  %v385_v20 = vpop.f32.mrf.mxu1 }
  0x91   : > { %v366_v21 = vadd.f32 %v881_v18, %v365_v19  ;;  %v386_v22 = vadd.f32 %v881_v18, %v385_v20 }
  0x93   : > { %vm445_vm1 = vcmp.ge.f32.partialorder %v366_v21, 0.0  ;;  %v477_v23 = vmul.f32 0.2, %v366_v21  ;;  %vm453_vm2 = vcmp.ge.f32.partialorder %v386_v22, 0.0  ;;  %v485_v24 = vmul.f32 0.2, %v386_v22 }
  0x95   : > { %v509_v25 = vsel %vm445_vm1, %v366_v21, %v477_v23  ;;  %v517_v26 = vsel %vm453_vm2, %v386_v22, %v485_v24 }
  0x96   : > { %v541_v27 = vpack.c.bf16 %v509_v25, %v509_v25  ;;  %v549_v28 = vpack.c.bf16 %v517_v26, %v517_v26 }
  0x97   : > { %v405_v29 = vpop.f32.mrf.mxu2  ;;  %v425_v30 = vpop.f32.mrf.mxu3 }
  0x98   : > { %574 = vst.msk [vmem:[%s890_s27] sm:$0xf] %vm573_vm3, %v541_v27  ;;  %v406_v31 = vadd.f32 %v881_v18, %v405_v29  ;;  %v426_v32 = vadd.f32 %v881_v18, %v425_v30  ;;  %v367_v33 = vpop.f32.mrf.mxu0  ;;  %v387_v34 = vpop.f32.mrf.mxu1 }
  0x99   : > { %582 = vst.msk [vmem:[%s890_s27 + $0x20] sm:$0xf] %vm573_vm3, %v549_v28  ;;  %v368_v35 = vadd.f32 %v881_v18, %v367_v33  ;;  %v388_v36 = vadd.f32 %v881_v18, %v387_v34 }
  0x9a   : > { %vm461_vm4 = vcmp.ge.f32.partialorder %v406_v31, 0.0  ;;  %v493_v37 = vmul.f32 0.2, %v406_v31  ;;  %vm469_vm5 = vcmp.ge.f32.partialorder %v426_v32, 0.0  ;;  %v501_v38 = vmul.f32 0.2, %v426_v32 }
  0x9b   : > { %vm446_vm6 = vcmp.ge.f32.partialorder %v368_v35, 0.0  ;;  %v478_v39 = vmul.f32 0.2, %v368_v35  ;;  %vm454_vm7 = vcmp.ge.f32.partialorder %v388_v36, 0.0  ;;  %v486_v40 = vmul.f32 0.2, %v388_v36 }
  0x9c   : > { %v525_v41 = vsel %vm461_vm4, %v406_v31, %v493_v37  ;;  %v533_v42 = vsel %vm469_vm5, %v426_v32, %v501_v38 }
  0x9d   : > { %v557_v43 = vpack.c.bf16 %v525_v41, %v525_v41  ;;  %v565_v44 = vpack.c.bf16 %v533_v42, %v533_v42  ;;  %v510_v45 = vsel %vm446_vm6, %v368_v35, %v478_v39  ;;  %v518_v46 = vsel %vm454_vm7, %v388_v36, %v486_v40 }
  0x9e   : > { %v542_v47 = vpack.c.bf16 %v510_v45, %v510_v45  ;;  %v550_v48 = vpack.c.bf16 %v518_v46, %v518_v46 }
  0x9f   : > { %590 = vst.msk [vmem:[%s890_s27 + $0x40] sm:$0xf] %vm573_vm3, %v557_v43  ;;  %v407_v49 = vpop.f32.mrf.mxu2  ;;  %v427_v50 = vpop.f32.mrf.mxu3 }
  0xa0   : > { %598 = vst.msk [vmem:[%s890_s27 + $0x60] sm:$0xf] %vm573_vm3, %v565_v44  ;;  %v408_v51 = vadd.f32 %v881_v18, %v407_v49  ;;  %v428_v52 = vadd.f32 %v881_v18, %v427_v50  ;;  %v370_v53 = vpop.f32.mrf.mxu0  ;;  %v390_v54 = vpop.f32.mrf.mxu1 }
  0xa1   : > { %575 = vst.msk [vmem:[%s890_s27 + $0x4] sm:$0xf] %vm573_vm3, %v542_v47  ;;  %v371_v55 = vadd.f32 %v881_v18, %v370_v53  ;;  %v391_v56 = vadd.f32 %v881_v18, %v390_v54 }
  0xa2   : > { %583 = vst.msk [vmem:[%s890_s27 + $0x24] sm:$0xf] %vm573_vm3, %v550_v48  ;;  %vm462_vm8 = vcmp.ge.f32.partialorder %v408_v51, 0.0  ;;  %v494_v57 = vmul.f32 0.2, %v408_v51  ;;  %vm470_vm9 = vcmp.ge.f32.partialorder %v428_v52, 0.0 }
  0xa3   : > { %v502_v58 = vmul.f32 0.2, %v428_v52  ;;  %vm447_vm10 = vcmp.ge.f32.partialorder %v371_v55, 0.0  ;;  %v479_v59 = vmul.f32 0.2, %v371_v55  ;;  %vm455_vm11 = vcmp.ge.f32.partialorder %v391_v56, 0.0 }
  0xa4   : > { %v526_v60 = vsel %vm462_vm8, %v408_v51, %v494_v57  ;;  %v487_v61 = vmul.f32 0.2, %v391_v56 }
  0xa5   : > { %v558_v62 = vpack.c.bf16 %v526_v60, %v526_v60  ;;  %v534_v63 = vsel %vm470_vm9, %v428_v52, %v502_v58  ;;  %v511_v0 = vsel %vm447_vm10, %v371_v55, %v479_v59 }
  0xa6   : > { %v566_v1 = vpack.c.bf16 %v534_v63, %v534_v63  ;;  %v543_v2 = vpack.c.bf16 %v511_v0, %v511_v0  ;;  %v519_v3 = vsel %vm455_vm11, %v391_v56, %v487_v61 }
  0xa7   : > { %591 = vst.msk [vmem:[%s890_s27 + $0x44] sm:$0xf] %vm573_vm3, %v558_v62  ;;  %v551_v4 = vpack.c.bf16 %v519_v3, %v519_v3  ;;  %v410_v5 = vpop.f32.mrf.mxu2  ;;  %v430_v6 = vpop.f32.mrf.mxu3 }
  0xa8   : > { %599 = vst.msk [vmem:[%s890_s27 + $0x64] sm:$0xf] %vm573_vm3, %v566_v1  ;;  %v411_v7 = vadd.f32 %v881_v18, %v410_v5  ;;  %v431_v8 = vadd.f32 %v881_v18, %v430_v6  ;;  %v372_v9 = vpop.f32.mrf.mxu0  ;;  %v392_v10 = vpop.f32.mrf.mxu1 }
  0xa9   : > { %576 = vst.msk [vmem:[%s890_s27 + $0x8] sm:$0xf] %vm573_vm3, %v543_v2  ;;  %v373_v11 = vadd.f32 %v881_v18, %v372_v9  ;;  %v393_v12 = vadd.f32 %v881_v18, %v392_v10 }
  0xaa   : > { %584 = vst.msk [vmem:[%s890_s27 + $0x28] sm:$0xf] %vm573_vm3, %v551_v4  ;;  %vm463_vm12 = vcmp.ge.f32.partialorder %v411_v7, 0.0  ;;  %v495_v13 = vmul.f32 0.2, %v411_v7  ;;  %vm471_vm13 = vcmp.ge.f32.partialorder %v431_v8, 0.0 }
  0xab   : > { %v503_v14 = vmul.f32 0.2, %v431_v8  ;;  %vm448_vm14 = vcmp.ge.f32.partialorder %v373_v11, 0.0  ;;  %v480_v15 = vmul.f32 0.2, %v373_v11  ;;  %vm456_vm15 = vcmp.ge.f32.partialorder %v393_v12, 0.0 }
  0xac   : > { %v527_v16 = vsel %vm463_vm12, %v411_v7, %v495_v13  ;;  %v488_v17 = vmul.f32 0.2, %v393_v12 }
  0xad   : > { %v559_v19 = vpack.c.bf16 %v527_v16, %v527_v16  ;;  %v535_v20 = vsel %vm471_vm13, %v431_v8, %v503_v14  ;;  %v512_v21 = vsel %vm448_vm14, %v373_v11, %v480_v15 }
  0xae   : > { %v567_v22 = vpack.c.bf16 %v535_v20, %v535_v20  ;;  %v544_v23 = vpack.c.bf16 %v512_v21, %v512_v21  ;;  %v520_v24 = vsel %vm456_vm15, %v393_v12, %v488_v17 }
  0xaf   : > { %592 = vst.msk [vmem:[%s890_s27 + $0x48] sm:$0xf] %vm573_vm3, %v559_v19  ;;  %v552_v25 = vpack.c.bf16 %v520_v24, %v520_v24  ;;  %v412_v26 = vpop.f32.mrf.mxu2  ;;  %v432_v27 = vpop.f32.mrf.mxu3 }
  0xb0   : > { %600 = vst.msk [vmem:[%s890_s27 + $0x68] sm:$0xf] %vm573_vm3, %v567_v22  ;;  %v413_v28 = vadd.f32 %v881_v18, %v412_v26  ;;  %v433_v29 = vadd.f32 %v881_v18, %v432_v27  ;;  %v375_v30 = vpop.f32.mrf.mxu0  ;;  %v395_v31 = vpop.f32.mrf.mxu1 }
  0xb1   : > { %577 = vst.msk [vmem:[%s890_s27 + $0xc] sm:$0xf] %vm573_vm3, %v544_v23  ;;  %v376_v32 = vadd.f32 %v881_v18, %v375_v30  ;;  %v396_v33 = vadd.f32 %v881_v18, %v395_v31 }
  0xb2   : > { %585 = vst.msk [vmem:[%s890_s27 + $0x2c] sm:$0xf] %vm573_vm3, %v552_v25  ;;  %vm464_vm0 = vcmp.ge.f32.partialorder %v413_v28, 0.0  ;;  %v496_v34 = vmul.f32 0.2, %v413_v28  ;;  %vm472_vm1 = vcmp.ge.f32.partialorder %v433_v29, 0.0 }
  0xb3   : > { %v504_v35 = vmul.f32 0.2, %v433_v29  ;;  %vm449_vm2 = vcmp.ge.f32.partialorder %v376_v32, 0.0  ;;  %v481_v36 = vmul.f32 0.2, %v376_v32  ;;  %vm457_vm4 = vcmp.ge.f32.partialorder %v396_v33, 0.0 }
  0xb4   : > { %v528_v37 = vsel %vm464_vm0, %v413_v28, %v496_v34  ;;  %v489_v38 = vmul.f32 0.2, %v396_v33 }
  0xb5   : > { %v560_v39 = vpack.c.bf16 %v528_v37, %v528_v37  ;;  %v536_v40 = vsel %vm472_vm1, %v433_v29, %v504_v35  ;;  %v513_v41 = vsel %vm449_vm2, %v376_v32, %v481_v36 }
  0xb6   : > { %v568_v42 = vpack.c.bf16 %v536_v40, %v536_v40  ;;  %v545_v43 = vpack.c.bf16 %v513_v41, %v513_v41  ;;  %v521_v44 = vsel %vm457_vm4, %v396_v33, %v489_v38 }
  0xb7   : > { %593 = vst.msk [vmem:[%s890_s27 + $0x4c] sm:$0xf] %vm573_vm3, %v560_v39  ;;  %v553_v45 = vpack.c.bf16 %v521_v44, %v521_v44  ;;  %v415_v46 = vpop.f32.mrf.mxu2  ;;  %v435_v47 = vpop.f32.mrf.mxu3 }
  0xb8   : > { %601 = vst.msk [vmem:[%s890_s27 + $0x6c] sm:$0xf] %vm573_vm3, %v568_v42  ;;  %v416_v48 = vadd.f32 %v881_v18, %v415_v46  ;;  %v436_v49 = vadd.f32 %v881_v18, %v435_v47  ;;  %v377_v50 = vpop.f32.mrf.mxu0  ;;  %v397_v51 = vpop.f32.mrf.mxu1 }
  0xb9   : > { %578 = vst.msk [vmem:[%s890_s27 + $0x10] sm:$0xf] %vm573_vm3, %v545_v43  ;;  %v378_v52 = vadd.f32 %v881_v18, %v377_v50  ;;  %v398_v53 = vadd.f32 %v881_v18, %v397_v51 }
  0xba   : > { %586 = vst.msk [vmem:[%s890_s27 + $0x30] sm:$0xf] %vm573_vm3, %v553_v45  ;;  %vm465_vm5 = vcmp.ge.f32.partialorder %v416_v48, 0.0  ;;  %v497_v54 = vmul.f32 0.2, %v416_v48  ;;  %vm473_vm6 = vcmp.ge.f32.partialorder %v436_v49, 0.0 }
  0xbb   : > { %v505_v55 = vmul.f32 0.2, %v436_v49  ;;  %vm450_vm7 = vcmp.ge.f32.partialorder %v378_v52, 0.0  ;;  %v482_v56 = vmul.f32 0.2, %v378_v52  ;;  %vm458_vm8 = vcmp.ge.f32.partialorder %v398_v53, 0.0 }
  0xbc   : > { %v529_v57 = vsel %vm465_vm5, %v416_v48, %v497_v54  ;;  %v490_v58 = vmul.f32 0.2, %v398_v53 }
  0xbd   : > { %v561_v59 = vpack.c.bf16 %v529_v57, %v529_v57  ;;  %v537_v60 = vsel %vm473_vm6, %v436_v49, %v505_v55  ;;  %v514_v61 = vsel %vm450_vm7, %v378_v52, %v482_v56 }
  0xbe   : > { %v569_v62 = vpack.c.bf16 %v537_v60, %v537_v60  ;;  %v546_v63 = vpack.c.bf16 %v514_v61, %v514_v61  ;;  %v522_v0 = vsel %vm458_vm8, %v398_v53, %v490_v58 }
  0xbf   : > { %594 = vst.msk [vmem:[%s890_s27 + $0x50] sm:$0xf] %vm573_vm3, %v561_v59  ;;  %v554_v1 = vpack.c.bf16 %v522_v0, %v522_v0  ;;  %v417_v2 = vpop.f32.mrf.mxu2  ;;  %v437_v3 = vpop.f32.mrf.mxu3 }
  0xc0   : > { %602 = vst.msk [vmem:[%s890_s27 + $0x70] sm:$0xf] %vm573_vm3, %v569_v62  ;;  %v418_v4 = vadd.f32 %v881_v18, %v417_v2  ;;  %v438_v5 = vadd.f32 %v881_v18, %v437_v3  ;;  %v380_v6 = vpop.f32.mrf.mxu0  ;;  %v400_v7 = vpop.f32.mrf.mxu1 }
  0xc1   : > { %579 = vst.msk [vmem:[%s890_s27 + $0x14] sm:$0xf] %vm573_vm3, %v546_v63  ;;  %v381_v8 = vadd.f32 %v881_v18, %v380_v6  ;;  %v401_v9 = vadd.f32 %v881_v18, %v400_v7 }
  0xc2   : > { %587 = vst.msk [vmem:[%s890_s27 + $0x34] sm:$0xf] %vm573_vm3, %v554_v1  ;;  %vm466_vm9 = vcmp.ge.f32.partialorder %v418_v4, 0.0  ;;  %v498_v10 = vmul.f32 0.2, %v418_v4  ;;  %vm474_vm10 = vcmp.ge.f32.partialorder %v438_v5, 0.0 }
  0xc3   : > { %v506_v11 = vmul.f32 0.2, %v438_v5  ;;  %vm451_vm11 = vcmp.ge.f32.partialorder %v381_v8, 0.0  ;;  %v483_v12 = vmul.f32 0.2, %v381_v8  ;;  %vm459_vm12 = vcmp.ge.f32.partialorder %v401_v9, 0.0 }
  0xc4   : > { %v530_v13 = vsel %vm466_vm9, %v418_v4, %v498_v10  ;;  %v491_v14 = vmul.f32 0.2, %v401_v9 }
  0xc5   : > { %v562_v15 = vpack.c.bf16 %v530_v13, %v530_v13  ;;  %v538_v16 = vsel %vm474_vm10, %v438_v5, %v506_v11  ;;  %v515_v17 = vsel %vm451_vm11, %v381_v8, %v483_v12 }
  0xc6   : > { %v570_v19 = vpack.c.bf16 %v538_v16, %v538_v16  ;;  %v547_v20 = vpack.c.bf16 %v515_v17, %v515_v17  ;;  %v523_v21 = vsel %vm459_vm12, %v401_v9, %v491_v14 }
  0xc7   : > { %595 = vst.msk [vmem:[%s890_s27 + $0x54] sm:$0xf] %vm573_vm3, %v562_v15  ;;  %v555_v22 = vpack.c.bf16 %v523_v21, %v523_v21  ;;  %v420_v23 = vpop.f32.mrf.mxu2  ;;  %v440_v24 = vpop.f32.mrf.mxu3 }
  0xc8   : > { %603 = vst.msk [vmem:[%s890_s27 + $0x74] sm:$0xf] %vm573_vm3, %v570_v19  ;;  %v421_v25 = vadd.f32 %v881_v18, %v420_v23  ;;  %v441_v26 = vadd.f32 %v881_v18, %v440_v24  ;;  %v382_v27 = vpop.f32.mrf.mxu0  ;;  %v402_v28 = vpop.f32.mrf.mxu1 }
  0xc9   : > { %580 = vst.msk [vmem:[%s890_s27 + $0x18] sm:$0xf] %vm573_vm3, %v547_v20  ;;  %v383_v29 = vadd.f32 %v881_v18, %v382_v27  ;;  %v403_v30 = vadd.f32 %v881_v18, %v402_v28 }
  0xca   : > { %588 = vst.msk [vmem:[%s890_s27 + $0x38] sm:$0xf] %vm573_vm3, %v555_v22  ;;  %vm467_vm13 = vcmp.ge.f32.partialorder %v421_v25, 0.0  ;;  %v499_v31 = vmul.f32 0.2, %v421_v25  ;;  %vm475_vm14 = vcmp.ge.f32.partialorder %v441_v26, 0.0 }
  0xcb   : > { %v507_v32 = vmul.f32 0.2, %v441_v26  ;;  %vm452_vm15 = vcmp.ge.f32.partialorder %v383_v29, 0.0  ;;  %v484_v33 = vmul.f32 0.2, %v383_v29  ;;  %vm460_vm0 = vcmp.ge.f32.partialorder %v403_v30, 0.0 }
  0xcc   : > { %v531_v34 = vsel %vm467_vm13, %v421_v25, %v499_v31  ;;  %v492_v35 = vmul.f32 0.2, %v403_v30 }
  0xcd   : > { %v563_v36 = vpack.c.bf16 %v531_v34, %v531_v34  ;;  %v539_v37 = vsel %vm475_vm14, %v441_v26, %v507_v32  ;;  %v516_v38 = vsel %vm452_vm15, %v383_v29, %v484_v33 }
  0xce   : > { %v571_v39 = vpack.c.bf16 %v539_v37, %v539_v37  ;;  %v548_v40 = vpack.c.bf16 %v516_v38, %v516_v38  ;;  %v524_v41 = vsel %vm460_vm0, %v403_v30, %v492_v35 }
  0xcf   : > { %596 = vst.msk [vmem:[%s890_s27 + $0x58] sm:$0xf] %vm573_vm3, %v563_v36  ;;  %v556_v42 = vpack.c.bf16 %v524_v41, %v524_v41  ;;  %v422_v43 = vpop.f32.mrf.mxu2  ;;  %v442_v44 = vpop.f32.mrf.mxu3 }
  0xd0   : > { %604 = vst.msk [vmem:[%s890_s27 + $0x78] sm:$0xf] %vm573_vm3, %v571_v39  ;;  %v423_v45 = vadd.f32 %v881_v18, %v422_v43  ;;  %v443_v46 = vadd.f32 %v881_v18, %v442_v44 }
  0xd1   : > { %581 = vst.msk [vmem:[%s890_s27 + $0x1c] sm:$0xf] %vm573_vm3, %v548_v40 }
  0xd2   : > { %589 = vst.msk [vmem:[%s890_s27 + $0x3c] sm:$0xf] %vm573_vm3, %v556_v42  ;;  %vm468_vm1 = vcmp.ge.f32.partialorder %v423_v45, 0.0  ;;  %v500_v47 = vmul.f32 0.2, %v423_v45  ;;  %vm476_vm2 = vcmp.ge.f32.partialorder %v443_v46, 0.0 }
  0xd3   : > { %v508_v48 = vmul.f32 0.2, %v443_v46 }
  0xd4   : > { %v532_v49 = vsel %vm468_vm1, %v423_v45, %v500_v47 }
  0xd5   : > { %v564_v50 = vpack.c.bf16 %v532_v49, %v532_v49  ;;  %v540_v51 = vsel %vm476_vm2, %v443_v46, %v508_v48 }
  0xd6   : > { %v572_v52 = vpack.c.bf16 %v540_v51, %v540_v51 }
  0xd7   : > { %597 = vst.msk [vmem:[%s890_s27 + $0x5c] sm:$0xf] %vm573_vm3, %v564_v50 }
  0xd8   : > { %605 = vst.msk [vmem:[%s890_s27 + $0x7c] sm:$0xf] %vm573_vm3, %v572_v52 }
  0xd9 PF: > { %s13_s12 = sadd.s32 1, %s800_s12  }
  0xda   : > { %p10_p4 = scmp.ge.s32.totalorder %s13_s12, 4  }
  0xdc   :  { %12 = sbr.rel (!%p10_p4) target bundleno = 1 (0x1), region = 62 }

// kernel: _lambda_.6
= control target key start
LH: loop header
LB: loop body
LE: loop exit
PB: predicated region body
PF: predicated region fallthrough
CT: control target
= control target key end

     0   :  { %s589_s12 = smov 0   ;;  %s665_s0 = inlined_call_operand.vmem [shape: bf16[64,216], index: 0, kind: input, shape index: {}]   ;;  %s666_s1 = inlined_call_operand.vmem [shape: bf16[216,16], index: 1, kind: input, shape index: {}]   ;;  %s667_s2 = inlined_call_operand.vmem [shape: f32[1,16], index: 2, kind: input, shape index: {}]   ;;  %s668_s3 = inlined_call_operand.vmem [shape: bf16[64,16], index: 3, kind: output, shape index: {}]  }
   0x1 LB: > { %s438_s13 = sadd.s32 4294967295, %s567_s12   ;;  %p442_p0 = scmp.ge.s32.totalorder %s567_s12, 1  ;;  %s567_s12 = sphi %s589_s12, %s13_s12  }
   0x2   : > { %p139_p1 = scmp.lt.s32.totalorder %s567_s12, 3 }
   0x4   : > { %p140_p2 = pnand %p442_p0, %p139_p1 }
   0x5   : > { %s443_s20 = sshll.u32 (!%p140_p2), %s438_s13, 2 }
   0x6   : > { %143 = sbr.rel (%p140_p2) target bundleno = 194 (0xc2), region = 32  ;;  %p165_p3 = scmp.lt.s32.totalorder (!%p140_p2), %s443_s20, 7 }
   0xb   : > { %v532_v0 = vld [vmem:[%s666_s1 + $0x38] sm:$0xff]  ;;  %v208_v1 = vld [vmem:[%s666_s1 + $0x68] sm:$0xf]  ;;  %vm319_vm0 = vcmask 1043456   ;;  %v531_v3 = vld [vmem:[%s666_s1 + $0x30] sm:$0xff]  ;;  %s670_s20 = smov (!%p165_p3, %s443_s20), 7 }
   0xc   : > { %v284_v2 = vunpack.c.l.b16 %v208_v1  ;;  %323 = vmatpush.bf16.msra.mxu0 %v532_v0  ;;  %538 = vmatpush.bf16.msra.mxu2 %v532_v0  ;;  %v537_v6 = vld [vmem:[%s666_s1 + $0x60] sm:$0xff]  ;;  %v530_v7 = vld [vmem:[%s666_s1 + $0x28] sm:$0xff]  ;;  %v536_v8 = vld [vmem:[%s666_s1 + $0x58] sm:$0xff]  ;;  %s520_s6 = sshll.u32 %s670_s20, 3  ;;  %vm312_vm1 = vcmask 719872   ;;  %s447_s24 = sshll.u32 %s670_s20, 2 }
   0xd   : > { %v529_v9 = vld [vmem:[%s666_s1 + $0x20] sm:$0xff]  ;;  %v535_v10 = vld [vmem:[%s666_s1 + $0x50] sm:$0xff]  ;;  %v528_v11 = vld [vmem:[%s666_s1 + $0x18] sm:$0xff]  ;;  %s169_s14 = scalar_lea.vmem %s665_s0, %s520_s6  ;;  %s652_s27 = scalar_lea.vmem %s668_s3, %s447_s24  ;;  %vm377_vm3 = vcmask 125952  }
   0xe   : > { %v298_v4 = vpack.c.b16 %v284_v2, %v284_v2  ;;  %v534_v12 = vld [vmem:[%s666_s1 + $0x48] sm:$0xff]  ;;  %v527_v13 = vld [vmem:[%s666_s1 + $0x10] sm:$0xff]  ;;  %v533_v14 = vld [vmem:[%s666_s1 + $0x40] sm:$0xff] }
   0xf   : > { %v526_v15 = vld [vmem:[%s666_s1 + $0x8] sm:$0xff]  ;;  %v523_v16 = vld [vmem:[%s169_s14 + $0x14] sm:$0xf]  ;;  %v460_v17 = vld [vmem:[%s169_s14 + $0x18] sm:$0xf0] }
  0x10   : > { %v321_v5 = vsel %vm319_vm0, %v298_v4, 0  ;;  %324 = vmatpush.bf16.msra.mxu0 %v531_v3  ;;  %539 = vmatpush.bf16.msra.mxu2 %v531_v3  ;;  %v521_v18 = vld [vmem:[%s169_s14 + $0x4] sm:$0xf]  ;;  %v452_v19 = vld [vmem:[%s169_s14 + $0x8] sm:$0xf0]  ;;  %v463_v20 = vor.u32 %v523_v16, %v460_v17 }
  0x11   : > { %546 = vmatpush.bf16.msra.mxu3 %v321_v5  ;;  %344 = vmatpush.bf16.msra.mxu1 %v321_v5  ;;  %v525_v21 = vld [vmem:[%s666_s1] sm:$0xff]  ;;  %v455_v22 = vor.u32 %v521_v18, %v452_v19  ;;  %v522_v24 = vld [vmem:[%s169_s14 + $0x4] sm:$0xf0]  ;;  %v458_v25 = vld [vmem:[%s169_s14 + $0x10] sm:$0xf] }
  0x12   : > { %v450_v23 = vld [vmem:[%s169_s14] sm:$0xf]  ;;  %v524_v26 = vld [vmem:[%s169_s14 + $0x14] sm:$0xf0] }
  0x13   : > { %v451_v27 = vor.u32 %v522_v24, %v450_v23  ;;  %v459_v28 = vor.u32 %v524_v26, %v458_v25  ;;  %v560_v29 = vld [vmem:[%s667_s2] ss:$0 sm:$0xff] }
  0x14   : > { %325 = vmatpush.bf16.msra.mxu0 %v530_v7  ;;  %540 = vmatpush.bf16.msra.mxu2 %v530_v7 }
  0x15   : > { %547 = vmatpush.bf16.msra.mxu3 %v537_v6  ;;  %345 = vmatpush.bf16.msra.mxu1 %v537_v6 }
  0x18   : > { %326 = vmatpush.bf16.msra.mxu0 %v529_v9  ;;  %541 = vmatpush.bf16.msra.mxu2 %v529_v9 }
  0x19   : > { %548 = vmatpush.bf16.msra.mxu3 %v536_v8  ;;  %346 = vmatpush.bf16.msra.mxu1 %v536_v8 }
  0x1c   : > { %327 = vmatpush.bf16.msra.mxu0 %v528_v11  ;;  %542 = vmatpush.bf16.msra.mxu2 %v528_v11 }
  0x1d   : > { %549 = vmatpush.bf16.msra.mxu3 %v535_v10  ;;  %347 = vmatpush.bf16.msra.mxu1 %v535_v10 }
  0x20   : > { %328 = vmatpush.bf16.msra.mxu0 %v527_v13  ;;  %543 = vmatpush.bf16.msra.mxu2 %v527_v13 }
  0x21   : > { %550 = vmatpush.bf16.msra.mxu3 %v534_v12  ;;  %348 = vmatpush.bf16.msra.mxu1 %v534_v12 }
  0x24   : > { %329 = vmatpush.bf16.msra.mxu0 %v526_v15  ;;  %544 = vmatpush.bf16.msra.mxu2 %v526_v15 }
  0x25   : > { %551 = vmatpush.bf16.msra.mxu3 %v533_v14  ;;  %349 = vmatpush.bf16.msra.mxu1 %v533_v14 }
  0x28   : > { %517 = vmatmul.msk.bf16.vlgmr.msra.gmra.mxu3 %vm312_vm1, %v463_v20  ;;  %330 = vmatpush.bf16.msra.mxu0 %v525_v21 }
  0x29   : > { %516 = vmatmul.msk.bf16.vlgmr.msra.gmra.mxu1 %vm312_vm1, %v455_v22  ;;  %545 = vmatpush.bf16.msra.mxu2 %v525_v21 }
  0x2b   : > { %331 = vmatmul.bf16.vlgmr.msra.gmra.mxu0 %v451_v27 }
  0x2c   : > { %336 = vmatmul.bf16.vlgmr.msra.gmra.mxu2 %v459_v28 }
  0xa6   : > { %v351_v30 = vpop.f32.mrf.mxu1 }
  0xa8   : > { %v332_v31 = vpop.f32.mrf.mxu0 }
  0xa9   : > { %v333_v32 = vadd.f32 %v560_v29, %v332_v31 }
  0xab   : > { %v352_v33 = vadd.f32 %v351_v30, %v333_v32  ;;  %v356_v36 = vpop.f32.mrf.mxu3 }
  0xad   : > { %vm361_vm2 = vcmp.ge.f32.partialorder %v352_v33, 0.0  ;;  %v365_v34 = vmul.f32 0.2, %v352_v33 }
  0xae   : > { %v353_v43 = vpop.f32.mrf.mxu1 }
  0xaf   : > { %v369_v35 = vsel %vm361_vm2, %v352_v33, %v365_v34  ;;  %v337_v37 = vpop.f32.mrf.mxu2 }
  0xb0   : > { %v373_v38 = vpack.c.bf16 %v369_v35, %v369_v35  ;;  %v338_v39 = vadd.f32 %v560_v29, %v337_v37  ;;  %v334_v40 = vpop.f32.mrf.mxu0 }
  0xb1   : > { %v335_v41 = vadd.f32 %v560_v29, %v334_v40 }
  0xb2   : > { %378 = vst.msk [vmem:[%s652_s27] sm:$0xf] %vm377_vm3, %v373_v38  ;;  %v357_v42 = vadd.f32 %v356_v36, %v338_v39 }
  0xb3   : > { %v354_v44 = vadd.f32 %v353_v43, %v335_v41  ;;  %v358_v53 = vpop.f32.mrf.mxu3 }
  0xb4   : > { %vm363_vm4 = vcmp.ge.f32.partialorder %v357_v42, 0.0  ;;  %v367_v45 = vmul.f32 0.2, %v357_v42 }
  0xb5   : > { %vm362_vm5 = vcmp.ge.f32.partialorder %v354_v44, 0.0  ;;  %v366_v46 = vmul.f32 0.2, %v354_v44 }
  0xb6   : > { %v371_v47 = vsel %vm363_vm4, %v357_v42, %v367_v45 }
  0xb7   : > { %v370_v48 = vsel %vm362_vm5, %v354_v44, %v366_v46  ;;  %v339_v49 = vpop.f32.mrf.mxu2  ;;  %v375_v52 = vpack.c.bf16 %v371_v47, %v371_v47 }
  0xb8   : > { %v374_v50 = vpack.c.bf16 %v370_v48, %v370_v48  ;;  %v340_v51 = vadd.f32 %v560_v29, %v339_v49 }
  0xb9   : > { %380 = vst.msk [vmem:[%s652_s27 + $0x8] sm:$0xf] %vm377_vm3, %v375_v52 }
  0xba   : > { %379 = vst.msk [vmem:[%s652_s27 + $0x4] sm:$0xf] %vm377_vm3, %v374_v50  ;;  %v359_v54 = vadd.f32 %v358_v53, %v340_v51 }
  0xbc   : > { %vm364_vm6 = vcmp.ge.f32.partialorder %v359_v54, 0.0  ;;  %v368_v55 = vmul.f32 0.2, %v359_v54 }
  0xbe   : > { %v372_v56 = vsel %vm364_vm6, %v359_v54, %v368_v55 }
  0xbf   : > { %v376_v57 = vpack.c.bf16 %v372_v56, %v372_v56 }
  0xc1   : > { %381 = vst.msk [vmem:[%s652_s27 + $0xc] sm:$0xf] %vm377_vm3, %v376_v57 }
  0xc2 PF: > { %s13_s12 = sadd.s32 1, %s567_s12  }
  0xc3   : > { %p10_p4 = scmp.ge.s32.totalorder %s13_s12, 4  }
  0xc5   :  { %12 = sbr.rel (!%p10_p4) target bundleno = 1 (0x1), region = 62 }

// kernel: _lambda_.7
= control target key start
LH: loop header
LB: loop body
LE: loop exit
PB: predicated region body
PF: predicated region fallthrough
CT: control target
= control target key end

     0   :  { %vm258_vm0 = vcmask 392192   ;;  %vm326_vm2 = vcmask 257024   ;;  %s624_s1 = inlined_call_operand.vmem [shape: bf16[432,32], index: 1, kind: input, shape index: {}]   ;;  %s625_s0 = inlined_call_operand.vmem [shape: bf16[16,432], index: 0, kind: input, shape index: {}]   ;;  %s626_s2 = inlined_call_operand.vmem [shape: f32[1,32], index: 2, kind: input, shape index: {}]   ;;  %s627_s3 = inlined_call_operand.vmem [shape: bf16[16,32], index: 3, kind: output, shape index: {}]  }
   0x1   :  { %v469_v0 = vld [vmem:[%s624_s1 + $0x38] sm:$0xff]  ;;  %v468_v3 = vld [vmem:[%s624_s1 + $0x30] sm:$0xff]  ;;  %v467_v7 = vld [vmem:[%s624_s1 + $0x28] sm:$0xff] }
   0x2   :  { %v477_v1 = vld [vmem:[%s624_s1 + $0x78] sm:$0xff]  ;;  %262 = vmatpush.bf16.msra.mxu0 %v469_v0  ;;  %v476_v4 = vld [vmem:[%s624_s1 + $0x70] sm:$0xff]  ;;  %v475_v8 = vld [vmem:[%s624_s1 + $0x68] sm:$0xff] }
   0x3   :  { %v485_v2 = vld [vmem:[%s624_s1 + $0xb8] sm:$0xff]  ;;  %276 = vmatpush.bf16.msra.mxu1 %v477_v1  ;;  %v484_v5 = vld [vmem:[%s624_s1 + $0xb0] sm:$0xff]  ;;  %v483_v9 = vld [vmem:[%s624_s1 + $0xa8] sm:$0xff] }
   0x4   :  { %290 = vmatpush.bf16.msra.mxu2 %v485_v2  ;;  %v488_v6 = vld [vmem:[%s624_s1 + $0xd0] sm:$0xff]  ;;  %v487_v10 = vld [vmem:[%s624_s1 + $0xc8] sm:$0xff]  ;;  %v466_v11 = vld [vmem:[%s624_s1 + $0x20] sm:$0xff] }
   0x5   :  { %309 = vmatpush.bf16.msra.mxu3 %v488_v6  ;;  %v474_v12 = vld [vmem:[%s624_s1 + $0x60] sm:$0xff]  ;;  %v459_v15 = vld [vmem:[%s625_s0 + $0xc] sm:$0xf]  ;;  %v345_v16 = vld [vmem:[%s625_s0 + $0x18] sm:$0xf0] }
   0x6   :  { %263 = vmatpush.bf16.msra.mxu0 %v468_v3  ;;  %v482_v13 = vld [vmem:[%s624_s1 + $0xa0] sm:$0xff]  ;;  %v465_v17 = vld [vmem:[%s624_s1 + $0x18] sm:$0xff]  ;;  %v348_v20 = vor.u32 %v459_v15, %v345_v16  ;;  %v464_v21 = vld [vmem:[%s624_s1 + $0x10] sm:$0xff] }
   0x7   :  { %277 = vmatpush.bf16.msra.mxu1 %v476_v4  ;;  %v486_v14 = vld [vmem:[%s624_s1 + $0xc0] sm:$0xff]  ;;  %v473_v18 = vld [vmem:[%s624_s1 + $0x58] sm:$0xff]  ;;  %v472_v22 = vld [vmem:[%s624_s1 + $0x50] sm:$0xff] }
   0x8   :  { %291 = vmatpush.bf16.msra.mxu2 %v484_v5  ;;  %v481_v19 = vld [vmem:[%s624_s1 + $0x98] sm:$0xff]  ;;  %v480_v23 = vld [vmem:[%s624_s1 + $0x90] sm:$0xff]  ;;  %v463_v24 = vld [vmem:[%s624_s1 + $0x8] sm:$0xff] }
   0x9   :  { %310 = vmatpush.bf16.msra.mxu3 %v487_v10  ;;  %v471_v25 = vld [vmem:[%s624_s1 + $0x48] sm:$0xff]  ;;  %v462_v27 = vld [vmem:[%s624_s1] sm:$0xff]  ;;  %v460_v30 = vld [vmem:[%s625_s0 + $0xc] sm:$0xf0] }
   0xa   :  { %264 = vmatpush.bf16.msra.mxu0 %v467_v7  ;;  %v479_v26 = vld [vmem:[%s624_s1 + $0x88] sm:$0xff]  ;;  %v470_v28 = vld [vmem:[%s624_s1 + $0x40] sm:$0xff]  ;;  %v337_v32 = vld [vmem:[%s625_s0 + $0x10] sm:$0xf0] }
   0xb   :  { %278 = vmatpush.bf16.msra.mxu1 %v475_v8  ;;  %v335_v29 = vld [vmem:[%s625_s0] sm:$0xf]  ;;  %v458_v31 = vld [vmem:[%s625_s0 + $0x4] sm:$0xf]  ;;  %v343_v34 = vld [vmem:[%s625_s0 + $0x8] sm:$0xf] }
   0xc   :  { %292 = vmatpush.bf16.msra.mxu2 %v483_v9  ;;  %v478_v33 = vld [vmem:[%s624_s1 + $0x80] sm:$0xff]  ;;  %v461_v35 = vld [vmem:[%s625_s0 + $0x14] sm:$0xf0]  ;;  %v336_v36 = vor.u32 %v460_v30, %v335_v29  ;;  %v340_v37 = vor.u32 %v458_v31, %v337_v32 }
   0xd   :  { %311 = vmatpush.bf16.msra.mxu3 %v486_v14  ;;  %v344_v38 = vor.u32 %v461_v35, %v343_v34  ;;  %v489_v39 = vld [vmem:[%s626_s2] ss:$0 sm:$0xff] }
   0xe   :  { %265 = vmatpush.bf16.msra.mxu0 %v466_v11 }
   0xf   :  { %279 = vmatpush.bf16.msra.mxu1 %v474_v12 }
  0x10   :  { %293 = vmatpush.bf16.msra.mxu2 %v482_v13  ;;  %457 = vmatmul.msk.bf16.vlgmr.msra.gmra.mxu3 %vm258_vm0, %v348_v20 }
  0x12   :  { %266 = vmatpush.bf16.msra.mxu0 %v465_v17 }
  0x13   :  { %280 = vmatpush.bf16.msra.mxu1 %v473_v18 }
  0x14   :  { %294 = vmatpush.bf16.msra.mxu2 %v481_v19 }
  0x16   :  { %267 = vmatpush.bf16.msra.mxu0 %v464_v21 }
  0x17   :  { %281 = vmatpush.bf16.msra.mxu1 %v472_v22 }
  0x18   :  { %295 = vmatpush.bf16.msra.mxu2 %v480_v23 }
  0x1a   :  { %268 = vmatpush.bf16.msra.mxu0 %v463_v24 }
  0x1b   :  { %282 = vmatpush.bf16.msra.mxu1 %v471_v25 }
  0x1c   :  { %296 = vmatpush.bf16.msra.mxu2 %v479_v26 }
  0x1e   :  { %269 = vmatpush.bf16.msra.mxu0 %v462_v27 }
  0x1f   :  { %283 = vmatpush.bf16.msra.mxu1 %v470_v28 }
  0x20   :  { %297 = vmatpush.bf16.msra.mxu2 %v478_v33 }
  0x21   :  { %270 = vmatmul.bf16.vlgmr.msra.gmra.mxu0 %v336_v36 }
  0x22   :  { %284 = vmatmul.bf16.vlgmr.msra.gmra.mxu1 %v340_v37 }
  0x23   :  { %298 = vmatmul.bf16.vlgmr.msra.gmra.mxu2 %v344_v38 }
  0x93   :  { %v313_v44 = vpop.f32.mrf.mxu3 }
  0x9b   :  { %v315_v57 = vpop.f32.mrf.mxu3 }
  0x9e   :  { %v271_v40 = vpop.f32.mrf.mxu0 }
  0x9f   :  { %v272_v41 = vadd.f32 %v489_v39, %v271_v40  ;;  %v285_v42 = vpop.f32.mrf.mxu1 }
  0xa1   :  { %v286_v43 = vadd.f32 %v285_v42, %v272_v41 }
  0xa6   :  { %v299_v45 = vpop.f32.mrf.mxu2  ;;  %v273_v47 = vpop.f32.mrf.mxu0 }
  0xa7   :  { %v300_v46 = vadd.f32 %v299_v45, %v286_v43  ;;  %v274_v49 = vadd.f32 %v489_v39, %v273_v47  ;;  %v287_v51 = vpop.f32.mrf.mxu1 }
  0xa9   :  { %v314_v48 = vadd.f32 %v313_v44, %v300_v46  ;;  %v288_v53 = vadd.f32 %v287_v51, %v274_v49 }
  0xab   :  { %vm318_vm1 = vcmp.ge.f32.partialorder %v314_v48, 0.0  ;;  %v320_v50 = vmul.f32 0.2, %v314_v48 }
  0xad   :  { %v322_v52 = vsel %vm318_vm1, %v314_v48, %v320_v50 }
  0xae   :  { %v324_v54 = vpack.c.bf16 %v322_v52, %v322_v52  ;;  %v301_v55 = vpop.f32.mrf.mxu2 }
  0xaf   :  { %v302_v56 = vadd.f32 %v301_v55, %v288_v53 }
  0xb0   :  { %327 = vst.msk [vmem:[%s627_s3] sm:$0xf] %vm326_vm2, %v324_v54 }
  0xb1   :  { %v316_v58 = vadd.f32 %v315_v57, %v302_v56 }
  0xb3   :  { %vm319_vm3 = vcmp.ge.f32.partialorder %v316_v58, 0.0  ;;  %v321_v59 = vmul.f32 0.2, %v316_v58 }
  0xb5   :  { %v323_v60 = vsel %vm319_vm3, %v316_v58, %v321_v59 }
  0xb6   :  { %v325_v61 = vpack.c.bf16 %v323_v60, %v323_v60 }
  0xb8   :  { %328 = vst.msk [vmem:[%s627_s3 + $0x4] sm:$0xf] %vm326_vm2, %v325_v61 }

// kernel: _lambda_.8
= control target key start
LH: loop header
LB: loop body
LE: loop exit
PB: predicated region body
PF: predicated region fallthrough
CT: control target
= control target key end

     0   :  { %vm494_vm0 = vcmask 785408   ;;  %vm604_vm2 = vcmask 519168   ;;  %s1151_s1 = inlined_call_operand.vmem [shape: bf16[864,64], index: 1, kind: input, shape index: {}]   ;;  %s1152_s2 = inlined_call_operand.vmem [shape: f32[1,64], index: 2, kind: input, shape index: {}]   ;;  %s1153_s0 = inlined_call_operand.vmem [shape: bf16[16,864], index: 0, kind: input, shape index: {}]   ;;  %s1154_s3 = inlined_call_operand.vmem [shape: bf16[16,64], index: 3, kind: output, shape index: {}]  }
   0x1   :  { %v870_v0 = vld [vmem:[%s1151_s1 + $0x38] sm:$0xff]  ;;  %v869_v3 = vld [vmem:[%s1151_s1 + $0x30] sm:$0xff]  ;;  %v868_v8 = vld [vmem:[%s1151_s1 + $0x28] sm:$0xff] }
   0x2   :  { %v878_v1 = vld [vmem:[%s1151_s1 + $0x78] sm:$0xff]  ;;  %498 = vmatpush.bf16.msra.mxu0 %v870_v0  ;;  %v877_v4 = vld [vmem:[%s1151_s1 + $0x70] sm:$0xff]  ;;  %v876_v9 = vld [vmem:[%s1151_s1 + $0x68] sm:$0xff] }
   0x3   :  { %v886_v2 = vld [vmem:[%s1151_s1 + $0xb8] sm:$0xff]  ;;  %512 = vmatpush.bf16.msra.mxu1 %v878_v1  ;;  %v885_v6 = vld [vmem:[%s1151_s1 + $0xb0] sm:$0xff]  ;;  %v884_v10 = vld [vmem:[%s1151_s1 + $0xa8] sm:$0xff] }
   0x4   :  { %v894_v5 = vld [vmem:[%s1151_s1 + $0xf8] sm:$0xff]  ;;  %526 = vmatpush.bf16.msra.mxu2 %v886_v2  ;;  %v893_v7 = vld [vmem:[%s1151_s1 + $0xf0] sm:$0xff]  ;;  %v892_v11 = vld [vmem:[%s1151_s1 + $0xe8] sm:$0xff] }
   0x5   :  { %540 = vmatpush.bf16.msra.mxu3 %v894_v5  ;;  %v867_v12 = vld [vmem:[%s1151_s1 + $0x20] sm:$0xff]  ;;  %v866_v16 = vld [vmem:[%s1151_s1 + $0x18] sm:$0xff]  ;;  %v865_v20 = vld [vmem:[%s1151_s1 + $0x10] sm:$0xff] }
   0x6   :  { %499 = vmatpush.bf16.msra.mxu0 %v869_v3  ;;  %v875_v13 = vld [vmem:[%s1151_s1 + $0x60] sm:$0xff]  ;;  %v874_v17 = vld [vmem:[%s1151_s1 + $0x58] sm:$0xff]  ;;  %v873_v21 = vld [vmem:[%s1151_s1 + $0x50] sm:$0xff] }
   0x7   :  { %513 = vmatpush.bf16.msra.mxu1 %v877_v4  ;;  %v883_v14 = vld [vmem:[%s1151_s1 + $0xa0] sm:$0xff]  ;;  %v882_v18 = vld [vmem:[%s1151_s1 + $0x98] sm:$0xff]  ;;  %v881_v22 = vld [vmem:[%s1151_s1 + $0x90] sm:$0xff] }
   0x8   :  { %527 = vmatpush.bf16.msra.mxu2 %v885_v6  ;;  %v891_v15 = vld [vmem:[%s1151_s1 + $0xe0] sm:$0xff]  ;;  %v890_v19 = vld [vmem:[%s1151_s1 + $0xd8] sm:$0xff]  ;;  %v889_v23 = vld [vmem:[%s1151_s1 + $0xd0] sm:$0xff] }
   0x9   :  { %541 = vmatpush.bf16.msra.mxu3 %v893_v7  ;;  %v864_v24 = vld [vmem:[%s1151_s1 + $0x8] sm:$0xff]  ;;  %v863_v27 = vld [vmem:[%s1151_s1] sm:$0xff]  ;;  %v902_v31 = vld [vmem:[%s1151_s1 + $0x138] sm:$0xff] }
   0xa   :  { %500 = vmatpush.bf16.msra.mxu0 %v868_v8  ;;  %v872_v25 = vld [vmem:[%s1151_s1 + $0x48] sm:$0xff]  ;;  %v871_v29 = vld [vmem:[%s1151_s1 + $0x40] sm:$0xff]  ;;  %v859_v34 = vld [vmem:[%s1153_s0 + $0x18] sm:$0xf0] }
   0xb   :  { %514 = vmatpush.bf16.msra.mxu1 %v876_v9  ;;  %v880_v26 = vld [vmem:[%s1151_s1 + $0x88] sm:$0xff]  ;;  %v879_v30 = vld [vmem:[%s1151_s1 + $0x80] sm:$0xff]  ;;  %v910_v38 = vld [vmem:[%s1151_s1 + $0x178] sm:$0xff] }
   0xc   :  { %528 = vmatpush.bf16.msra.mxu2 %v884_v10  ;;  %v888_v28 = vld [vmem:[%s1151_s1 + $0xc8] sm:$0xff]  ;;  %v613_v33 = vld [vmem:[%s1153_s0] sm:$0xf]  ;;  %v860_v35 = vld [vmem:[%s1153_s0 + $0x20] sm:$0xf0] }
   0xd   :  { %542 = vmatpush.bf16.msra.mxu3 %v892_v11  ;;  %v621_v32 = vld [vmem:[%s1153_s0 + $0x8] sm:$0xf]  ;;  %v856_v36 = vld [vmem:[%s1153_s0 + $0x4] sm:$0xf]  ;;  %v615_v37 = vld [vmem:[%s1153_s0 + $0x1c] sm:$0xf0]  ;;  %v614_v41 = vor.u32 %v859_v34, %v613_v33 }
   0xe   :  { %501 = vmatpush.bf16.msra.mxu0 %v867_v12  ;;  %v916_v39 = vld [vmem:[%s1151_s1 + $0x1a8] sm:$0xff]  ;;  %v887_v40 = vld [vmem:[%s1151_s1 + $0xc0] sm:$0xff]  ;;  %v622_v42 = vor.u32 %v860_v35, %v621_v32  ;;  %v618_v45 = vor.u32 %v856_v36, %v615_v37  ;;  %v901_v46 = vld [vmem:[%s1151_s1 + $0x130] sm:$0xff] }
   0xf   :  { %515 = vmatpush.bf16.msra.mxu1 %v875_v13  ;;  %v857_v43 = vld [vmem:[%s1153_s0 + $0xc] sm:$0xf]  ;;  %v623_v44 = vld [vmem:[%s1153_s0 + $0x24] sm:$0xf0]  ;;  %v909_v47 = vld [vmem:[%s1151_s1 + $0x170] sm:$0xff] }
  0x10   :  { %529 = vmatpush.bf16.msra.mxu2 %v883_v14  ;;  %v915_v48 = vld [vmem:[%s1151_s1 + $0x1a0] sm:$0xff]  ;;  %v626_v49 = vor.u32 %v857_v43, %v623_v44  ;;  %v900_v50 = vld [vmem:[%s1151_s1 + $0x128] sm:$0xff]  ;;  %v914_v52 = vld [vmem:[%s1151_s1 + $0x198] sm:$0xff] }
  0x11   :  { %543 = vmatpush.bf16.msra.mxu3 %v891_v15  ;;  %v908_v51 = vld [vmem:[%s1151_s1 + $0x168] sm:$0xff]  ;;  %v899_v53 = vld [vmem:[%s1151_s1 + $0x120] sm:$0xff]  ;;  %v913_v55 = vld [vmem:[%s1151_s1 + $0x190] sm:$0xff] }
  0x12   :  { %502 = vmatpush.bf16.msra.mxu0 %v866_v16  ;;  %v907_v54 = vld [vmem:[%s1151_s1 + $0x160] sm:$0xff]  ;;  %v898_v56 = vld [vmem:[%s1151_s1 + $0x118] sm:$0xff]  ;;  %v912_v58 = vld [vmem:[%s1151_s1 + $0x188] sm:$0xff] }
  0x13   :  { %516 = vmatpush.bf16.msra.mxu1 %v874_v17  ;;  %v906_v57 = vld [vmem:[%s1151_s1 + $0x158] sm:$0xff]  ;;  %v897_v59 = vld [vmem:[%s1151_s1 + $0x110] sm:$0xff]  ;;  %v911_v61 = vld [vmem:[%s1151_s1 + $0x180] sm:$0xff] }
  0x14   :  { %530 = vmatpush.bf16.msra.mxu2 %v882_v18  ;;  %v905_v60 = vld [vmem:[%s1151_s1 + $0x150] sm:$0xff]  ;;  %v637_v62 = vld [vmem:[%s1153_s0 + $0x18] sm:$0xf]  ;;  %v896_v1 = vld [vmem:[%s1151_s1 + $0x108] sm:$0xff] }
  0x15   :  { %544 = vmatpush.bf16.msra.mxu3 %v890_v19  ;;  %v862_v63 = vld [vmem:[%s1153_s0 + $0x30] sm:$0xf0]  ;;  %v904_v2 = vld [vmem:[%s1151_s1 + $0x148] sm:$0xff]  ;;  %v895_v3 = vld [vmem:[%s1151_s1 + $0x100] sm:$0xff] }
  0x16   :  { %503 = vmatpush.bf16.msra.mxu0 %v865_v20  ;;  %v638_v0 = vor.u32 %v862_v63, %v637_v62  ;;  %v629_v4 = vld [vmem:[%s1153_s0 + $0x10] sm:$0xf]  ;;  %v861_v5 = vld [vmem:[%s1153_s0 + $0x28] sm:$0xf0]  ;;  %v903_v6 = vld [vmem:[%s1151_s1 + $0x140] sm:$0xff] }
  0x17   :  { %517 = vmatpush.bf16.msra.mxu1 %v873_v21  ;;  %v858_v7 = vld [vmem:[%s1153_s0 + $0x14] sm:$0xf]  ;;  %v631_v8 = vld [vmem:[%s1153_s0 + $0x2c] sm:$0xf0]  ;;  %v630_v9 = vor.u32 %v861_v5, %v629_v4  ;;  %v917_v12 = vld [vmem:[%s1152_s2] ss:$0 sm:$0xff] }
  0x18   :  { %531 = vmatpush.bf16.msra.mxu2 %v881_v22  ;;  %v634_v10 = vor.u32 %v858_v7, %v631_v8 }
  0x19   :  { %545 = vmatpush.bf16.msra.mxu3 %v889_v23 }
  0x1a   :  { %504 = vmatpush.bf16.msra.mxu0 %v864_v24 }
  0x1b   :  { %518 = vmatpush.bf16.msra.mxu1 %v872_v25 }
  0x1c   :  { %532 = vmatpush.bf16.msra.mxu2 %v880_v26 }
  0x1d   :  { %546 = vmatpush.bf16.msra.mxu3 %v888_v28 }
  0x1e   :  { %505 = vmatpush.bf16.msra.mxu0 %v863_v27 }
  0x1f   :  { %519 = vmatpush.bf16.msra.mxu1 %v871_v29 }
  0x20   :  { %533 = vmatpush.bf16.msra.mxu2 %v879_v30 }
  0x21   :  { %547 = vmatpush.bf16.msra.mxu3 %v887_v40  ;;  %506 = vmatmul.bf16.vlgmr.msra.gmra.mxu0 %v614_v41 }
  0x22   :  { %554 = vmatpush.bf16.msrb.mxu0 %v902_v31  ;;  %520 = vmatmul.bf16.vlgmr.msra.gmra.mxu1 %v618_v45 }
  0x23   :  { %568 = vmatpush.bf16.msrb.mxu1 %v910_v38  ;;  %534 = vmatmul.bf16.vlgmr.msra.gmra.mxu2 %v622_v42 }
  0x24   :  { %584 = vmatpush.bf16.msrb.mxu2 %v916_v39  ;;  %548 = vmatmul.bf16.vlgmr.msra.gmra.mxu3 %v626_v49 }
  0x26   :  { %555 = vmatpush.bf16.msrb.mxu0 %v901_v46 }
  0x27   :  { %569 = vmatpush.bf16.msrb.mxu1 %v909_v47 }
  0x28   :  { %585 = vmatpush.bf16.msrb.mxu2 %v915_v48 }
  0x2a   :  { %556 = vmatpush.bf16.msrb.mxu0 %v900_v50 }
  0x2b   :  { %570 = vmatpush.bf16.msrb.mxu1 %v908_v51 }
  0x2c   :  { %586 = vmatpush.bf16.msrb.mxu2 %v914_v52 }
  0x2e   :  { %557 = vmatpush.bf16.msrb.mxu0 %v899_v53 }
  0x2f   :  { %571 = vmatpush.bf16.msrb.mxu1 %v907_v54 }
  0x30   :  { %587 = vmatpush.bf16.msrb.mxu2 %v913_v55 }
  0x32   :  { %558 = vmatpush.bf16.msrb.mxu0 %v898_v56 }
  0x33   :  { %572 = vmatpush.bf16.msrb.mxu1 %v906_v57 }
  0x34   :  { %588 = vmatpush.bf16.msrb.mxu2 %v912_v58 }
  0x36   :  { %559 = vmatpush.bf16.msrb.mxu0 %v897_v59 }
  0x37   :  { %573 = vmatpush.bf16.msrb.mxu1 %v905_v60 }
  0x38   :  { %589 = vmatpush.bf16.msrb.mxu2 %v911_v61 }
  0x3a   :  { %560 = vmatpush.bf16.msrb.mxu0 %v896_v1 }
  0x3b   :  { %855 = vmatmul.msk.bf16.vlgmr.msrb.gmra.mxu2 %vm494_vm0, %v638_v0  ;;  %574 = vmatpush.bf16.msrb.mxu1 %v904_v2 }
  0x3e   :  { %561 = vmatpush.bf16.msrb.mxu0 %v895_v3 }
  0x3f   :  { %575 = vmatpush.bf16.msrb.mxu1 %v903_v6 }
  0x41   :  { %562 = vmatmul.bf16.vlgmr.msrb.gmra.mxu0 %v630_v9 }
  0x42   :  { %576 = vmatmul.bf16.vlgmr.msrb.gmra.mxu1 %v634_v10 }
  0x9e   :  { %v507_v11 = vpop.f32.mrf.mxu0 }
  0x9f   :  { %v521_v13 = vpop.f32.mrf.mxu1  ;;  %v508_v15 = vadd.f32 %v917_v12, %v507_v11 }
  0xa1   :  { %v522_v16 = vadd.f32 %v521_v13, %v508_v15 }
  0xa6   :  { %v535_v14 = vpop.f32.mrf.mxu2  ;;  %v509_v17 = vpop.f32.mrf.mxu0 }
  0xa7   :  { %v523_v18 = vpop.f32.mrf.mxu1  ;;  %v549_v19 = vpop.f32.mrf.mxu3  ;;  %v536_v21 = vadd.f32 %v535_v14, %v522_v16  ;;  %v510_v22 = vadd.f32 %v917_v12, %v509_v17 }
  0xa9   :  { %v550_v23 = vadd.f32 %v549_v19, %v536_v21  ;;  %v524_v24 = vadd.f32 %v523_v18, %v510_v22 }
  0xae   :  { %v537_v20 = vpop.f32.mrf.mxu2 }
  0xaf   :  { %v538_v29 = vadd.f32 %v537_v20, %v524_v24  ;;  %v551_v31 = vpop.f32.mrf.mxu3 }
  0xb1   :  { %v552_v33 = vadd.f32 %v551_v31, %v538_v29 }
  0xbe   :  { %v563_v25 = vpop.f32.mrf.mxu0  ;;  %v591_v28 = vpop.f32.mrf.mxu2 }
  0xbf   :  { %v564_v26 = vadd.f32 %v563_v25, %v550_v23  ;;  %v577_v27 = vpop.f32.mrf.mxu1 }
  0xc1   :  { %v578_v30 = vadd.f32 %v577_v27, %v564_v26 }
  0xc3   :  { %v592_v32 = vadd.f32 %v591_v28, %v578_v30 }
  0xc5   :  { %vm596_vm1 = vcmp.ge.f32.partialorder %v592_v32, 0.0  ;;  %v598_v34 = vmul.f32 0.2, %v592_v32 }
  0xc6   :  { %v565_v35 = vpop.f32.mrf.mxu0  ;;  %v593_v41 = vpop.f32.mrf.mxu2 }
  0xc7   :  { %v600_v36 = vsel %vm596_vm1, %v592_v32, %v598_v34  ;;  %v566_v37 = vadd.f32 %v565_v35, %v552_v33  ;;  %v579_v39 = vpop.f32.mrf.mxu1 }
  0xc8   :  { %v602_v38 = vpack.c.bf16 %v600_v36, %v600_v36 }
  0xc9   :  { %v580_v40 = vadd.f32 %v579_v39, %v566_v37 }
  0xca   :  { %605 = vst.msk [vmem:[%s1154_s3] sm:$0xf] %vm604_vm2, %v602_v38 }
  0xcb   :  { %v594_v42 = vadd.f32 %v593_v41, %v580_v40 }
  0xcd   :  { %vm597_vm3 = vcmp.ge.f32.partialorder %v594_v42, 0.0  ;;  %v599_v43 = vmul.f32 0.2, %v594_v42 }
  0xcf   :  { %v601_v44 = vsel %vm597_vm3, %v594_v42, %v599_v43 }
  0xd0   :  { %v603_v45 = vpack.c.bf16 %v601_v44, %v601_v44 }
  0xd2   :  { %606 = vst.msk [vmem:[%s1154_s3 + $0x4] sm:$0xf] %vm604_vm2, %v603_v45 }

// kernel: _lambda_.9
= control target key start
LH: loop header
LB: loop body
LE: loop exit
PB: predicated region body
PF: predicated region fallthrough
CT: control target
= control target key end

     0   :  { %vm966_vm0 = vcmask 523264   ;;  %vm1166_vm1 = vcmask 64512   ;;  %s2222_s1 = inlined_call_operand.vmem [shape: bf16[1728,8], index: 1, kind: input, shape index: {}]   ;;  %s2223_s2 = inlined_call_operand.vmem [shape: f32[1,8], index: 2, kind: input, shape index: {}]   ;;  %s2224_s0 = inlined_call_operand.vmem [shape: bf16[16,1728], index: 0, kind: input, shape index: {}]   ;;  %s2225_s3 = inlined_call_operand.vmem [shape: f32[16,8], index: 3, kind: output, shape index: {}]  }
   0x1   :  { %v1683_v0 = vld [vmem:[%s2222_s1 + $0x38] sm:$0xff]  ;;  %v1682_v4 = vld [vmem:[%s2222_s1 + $0x30] sm:$0xff]  ;;  %v1681_v8 = vld [vmem:[%s2222_s1 + $0x28] sm:$0xff] }
   0x2   :  { %v1699_v1 = vld [vmem:[%s2222_s1 + $0xb8] sm:$0xff]  ;;  %970 = vmatpush.bf16.msra.mxu0 %v1683_v0  ;;  %v1698_v5 = vld [vmem:[%s2222_s1 + $0xb0] sm:$0xff]  ;;  %v1697_v9 = vld [vmem:[%s2222_s1 + $0xa8] sm:$0xff] }
   0x3   :  { %v1691_v2 = vld [vmem:[%s2222_s1 + $0x78] sm:$0xff]  ;;  %998 = vmatpush.bf16.msra.mxu2 %v1699_v1  ;;  %v1690_v6 = vld [vmem:[%s2222_s1 + $0x70] sm:$0xff]  ;;  %v1689_v10 = vld [vmem:[%s2222_s1 + $0x68] sm:$0xff] }
   0x4   :  { %v1707_v3 = vld [vmem:[%s2222_s1 + $0xf8] sm:$0xff]  ;;  %984 = vmatpush.bf16.msra.mxu1 %v1691_v2  ;;  %v1706_v7 = vld [vmem:[%s2222_s1 + $0xf0] sm:$0xff]  ;;  %v1705_v11 = vld [vmem:[%s2222_s1 + $0xe8] sm:$0xff] }
   0x5   :  { %1012 = vmatpush.bf16.msra.mxu3 %v1707_v3  ;;  %v1680_v12 = vld [vmem:[%s2222_s1 + $0x20] sm:$0xff]  ;;  %v1679_v16 = vld [vmem:[%s2222_s1 + $0x18] sm:$0xff]  ;;  %v1678_v20 = vld [vmem:[%s2222_s1 + $0x10] sm:$0xff] }
   0x6   :  { %971 = vmatpush.bf16.msra.mxu0 %v1682_v4  ;;  %v1696_v13 = vld [vmem:[%s2222_s1 + $0xa0] sm:$0xff]  ;;  %v1695_v17 = vld [vmem:[%s2222_s1 + $0x98] sm:$0xff]  ;;  %v1694_v21 = vld [vmem:[%s2222_s1 + $0x90] sm:$0xff] }
   0x7   :  { %999 = vmatpush.bf16.msra.mxu2 %v1698_v5  ;;  %v1688_v14 = vld [vmem:[%s2222_s1 + $0x60] sm:$0xff]  ;;  %v1687_v18 = vld [vmem:[%s2222_s1 + $0x58] sm:$0xff]  ;;  %v1686_v22 = vld [vmem:[%s2222_s1 + $0x50] sm:$0xff] }
   0x8   :  { %985 = vmatpush.bf16.msra.mxu1 %v1690_v6  ;;  %v1704_v15 = vld [vmem:[%s2222_s1 + $0xe0] sm:$0xff]  ;;  %v1703_v19 = vld [vmem:[%s2222_s1 + $0xd8] sm:$0xff]  ;;  %v1702_v23 = vld [vmem:[%s2222_s1 + $0xd0] sm:$0xff] }
   0x9   :  { %1013 = vmatpush.bf16.msra.mxu3 %v1706_v7  ;;  %v1677_v24 = vld [vmem:[%s2222_s1 + $0x8] sm:$0xff]  ;;  %v1676_v28 = vld [vmem:[%s2222_s1] sm:$0xff]  ;;  %v1715_v30 = vld [vmem:[%s2222_s1 + $0x138] sm:$0xff] }
   0xa   :  { %972 = vmatpush.bf16.msra.mxu0 %v1681_v8  ;;  %v1693_v25 = vld [vmem:[%s2222_s1 + $0x88] sm:$0xff]  ;;  %v1692_v29 = vld [vmem:[%s2222_s1 + $0x80] sm:$0xff]  ;;  %v1731_v31 = vld [vmem:[%s2222_s1 + $0x1b8] sm:$0xff] }
   0xb   :  { %1000 = vmatpush.bf16.msra.mxu2 %v1697_v9  ;;  %v1685_v26 = vld [vmem:[%s2222_s1 + $0x48] sm:$0xff]  ;;  %v1684_v32 = vld [vmem:[%s2222_s1 + $0x40] sm:$0xff]  ;;  %v1669_v35 = vld [vmem:[%s2224_s0 + $0x34] sm:$0xf0] }
   0xc   :  { %986 = vmatpush.bf16.msra.mxu1 %v1689_v10  ;;  %v1701_v27 = vld [vmem:[%s2222_s1 + $0xc8] sm:$0xff]  ;;  %v1700_v33 = vld [vmem:[%s2222_s1 + $0xc0] sm:$0xff]  ;;  %v1723_v38 = vld [vmem:[%s2222_s1 + $0x178] sm:$0xff] }
   0xd   :  { %1014 = vmatpush.bf16.msra.mxu3 %v1705_v11  ;;  %v1175_v34 = vld [vmem:[%s2224_s0] sm:$0xf]  ;;  %v1183_v36 = vld [vmem:[%s2224_s0 + $0x8] sm:$0xf]  ;;  %v1739_v39 = vld [vmem:[%s2222_s1 + $0x1f8] sm:$0xff] }
   0xe   :  { %973 = vmatpush.bf16.msra.mxu0 %v1680_v12  ;;  %v1670_v37 = vld [vmem:[%s2224_s0 + $0x3c] sm:$0xf0]  ;;  %v1662_v40 = vld [vmem:[%s2224_s0 + $0x4] sm:$0xf]  ;;  %v1177_v41 = vld [vmem:[%s2224_s0 + $0x38] sm:$0xf0]  ;;  %v1176_v44 = vor.u32 %v1669_v35, %v1175_v34 }
   0xf   :  { %1001 = vmatpush.bf16.msra.mxu2 %v1696_v13  ;;  %v1663_v42 = vld [vmem:[%s2224_s0 + $0xc] sm:$0xf]  ;;  %v1185_v43 = vld [vmem:[%s2224_s0 + $0x40] sm:$0xf0]  ;;  %v1184_v45 = vor.u32 %v1670_v37, %v1183_v36  ;;  %v1714_v46 = vld [vmem:[%s2222_s1 + $0x130] sm:$0xff]  ;;  %v1180_v48 = vor.u32 %v1662_v40, %v1177_v41 }
  0x10   :  { %987 = vmatpush.bf16.msra.mxu1 %v1688_v14  ;;  %v1730_v47 = vld [vmem:[%s2222_s1 + $0x1b0] sm:$0xff]  ;;  %v1188_v49 = vor.u32 %v1663_v42, %v1185_v43  ;;  %v1713_v52 = vld [vmem:[%s2222_s1 + $0x128] sm:$0xff]  ;;  %v1712_v56 = vld [vmem:[%s2222_s1 + $0x120] sm:$0xff] }
  0x11   :  { %1015 = vmatpush.bf16.msra.mxu3 %v1704_v15  ;;  %v1722_v50 = vld [vmem:[%s2222_s1 + $0x170] sm:$0xff]  ;;  %v1729_v53 = vld [vmem:[%s2222_s1 + $0x1a8] sm:$0xff]  ;;  %v1728_v57 = vld [vmem:[%s2222_s1 + $0x1a0] sm:$0xff] }
  0x12   :  { %974 = vmatpush.bf16.msra.mxu0 %v1679_v16  ;;  %v1738_v51 = vld [vmem:[%s2222_s1 + $0x1f0] sm:$0xff]  ;;  %v1721_v54 = vld [vmem:[%s2222_s1 + $0x168] sm:$0xff]  ;;  %v1720_v58 = vld [vmem:[%s2222_s1 + $0x160] sm:$0xff] }
  0x13   :  { %1002 = vmatpush.bf16.msra.mxu2 %v1695_v17  ;;  %v1737_v55 = vld [vmem:[%s2222_s1 + $0x1e8] sm:$0xff]  ;;  %v1736_v59 = vld [vmem:[%s2222_s1 + $0x1e0] sm:$0xff]  ;;  %v1711_v60 = vld [vmem:[%s2222_s1 + $0x118] sm:$0xff] }
  0x14   :  { %988 = vmatpush.bf16.msra.mxu1 %v1687_v18  ;;  %v1727_v61 = vld [vmem:[%s2222_s1 + $0x198] sm:$0xff]  ;;  %v1710_v0 = vld [vmem:[%s2222_s1 + $0x110] sm:$0xff]  ;;  %v1709_v4 = vld [vmem:[%s2222_s1 + $0x108] sm:$0xff] }
  0x15   :  { %1016 = vmatpush.bf16.msra.mxu3 %v1703_v19  ;;  %v1719_v62 = vld [vmem:[%s2222_s1 + $0x158] sm:$0xff]  ;;  %v1726_v1 = vld [vmem:[%s2222_s1 + $0x190] sm:$0xff]  ;;  %v1725_v5 = vld [vmem:[%s2222_s1 + $0x188] sm:$0xff] }
  0x16   :  { %975 = vmatpush.bf16.msra.mxu0 %v1678_v20  ;;  %v1735_v63 = vld [vmem:[%s2222_s1 + $0x1d8] sm:$0xff]  ;;  %v1718_v2 = vld [vmem:[%s2222_s1 + $0x150] sm:$0xff]  ;;  %v1717_v6 = vld [vmem:[%s2222_s1 + $0x148] sm:$0xff] }
  0x17   :  { %1003 = vmatpush.bf16.msra.mxu2 %v1694_v21  ;;  %v1734_v3 = vld [vmem:[%s2222_s1 + $0x1d0] sm:$0xff]  ;;  %v1733_v7 = vld [vmem:[%s2222_s1 + $0x1c8] sm:$0xff]  ;;  %v1708_v8 = vld [vmem:[%s2222_s1 + $0x100] sm:$0xff] }
  0x18   :  { %989 = vmatpush.bf16.msra.mxu1 %v1686_v22  ;;  %v1724_v9 = vld [vmem:[%s2222_s1 + $0x180] sm:$0xff]  ;;  %v1747_v10 = vld [vmem:[%s2222_s1 + $0x238] sm:$0xff]  ;;  %v1191_v12 = vld [vmem:[%s2224_s0 + $0x10] sm:$0xf] }
  0x19   :  { %1017 = vmatpush.bf16.msra.mxu3 %v1702_v23  ;;  %v1763_v11 = vld [vmem:[%s2222_s1 + $0x2b8] sm:$0xff]  ;;  %v1671_v13 = vld [vmem:[%s2224_s0 + $0x44] sm:$0xf0]  ;;  %v1672_v15 = vld [vmem:[%s2224_s0 + $0x4c] sm:$0xf0] }
  0x1a   :  { %976 = vmatpush.bf16.msra.mxu0 %v1677_v24  ;;  %v1199_v14 = vld [vmem:[%s2224_s0 + $0x18] sm:$0xf]  ;;  %v1716_v16 = vld [vmem:[%s2222_s1 + $0x140] sm:$0xff]  ;;  %v1664_v18 = vld [vmem:[%s2224_s0 + $0x14] sm:$0xf]  ;;  %v1192_v22 = vor.u32 %v1671_v13, %v1191_v12 }
  0x1b   :  { %1004 = vmatpush.bf16.msra.mxu2 %v1693_v25  ;;  %v1732_v17 = vld [vmem:[%s2222_s1 + $0x1c0] sm:$0xff]  ;;  %v1193_v19 = vld [vmem:[%s2224_s0 + $0x48] sm:$0xf0]  ;;  %v1665_v20 = vld [vmem:[%s2224_s0 + $0x1c] sm:$0xf]  ;;  %v1200_v23 = vor.u32 %v1672_v15, %v1199_v14 }
  0x1c   :  { %990 = vmatpush.bf16.msra.mxu1 %v1685_v26  ;;  %v1201_v21 = vld [vmem:[%s2224_s0 + $0x50] sm:$0xf0]  ;;  %v1755_v24 = vld [vmem:[%s2222_s1 + $0x278] sm:$0xff]  ;;  %v1196_v26 = vor.u32 %v1664_v18, %v1193_v19  ;;  %v1753_v34 = vld [vmem:[%s2222_s1 + $0x268] sm:$0xff] }
  0x1d   :  { %1018 = vmatpush.bf16.msra.mxu3 %v1701_v27  ;;  %v1771_v25 = vld [vmem:[%s2222_s1 + $0x2f8] sm:$0xff]  ;;  %v1204_v27 = vor.u32 %v1665_v20, %v1201_v21  ;;  %v1769_v35 = vld [vmem:[%s2222_s1 + $0x2e8] sm:$0xff]  ;;  %v1744_v36 = vld [vmem:[%s2222_s1 + $0x220] sm:$0xff] }
  0x1e   :  { %977 = vmatpush.bf16.msra.mxu0 %v1676_v28  ;;  %v1746_v28 = vld [vmem:[%s2222_s1 + $0x230] sm:$0xff]  ;;  %v1760_v37 = vld [vmem:[%s2222_s1 + $0x2a0] sm:$0xff]  ;;  %v1743_v40 = vld [vmem:[%s2222_s1 + $0x218] sm:$0xff] }
  0x1f   :  { %1005 = vmatpush.bf16.msra.mxu2 %v1692_v29  ;;  %v1762_v29 = vld [vmem:[%s2222_s1 + $0x2b0] sm:$0xff]  ;;  %v1759_v41 = vld [vmem:[%s2222_s1 + $0x298] sm:$0xff]  ;;  %v1225_v14 = vld [vmem:[%s2224_s0 + $0x68] sm:$0xf0] }
  0x20   :  { %991 = vmatpush.bf16.msra.mxu1 %v1684_v32  ;;  %v1745_v32 = vld [vmem:[%s2222_s1 + $0x228] sm:$0xff]  ;;  %v1751_v42 = vld [vmem:[%s2222_s1 + $0x258] sm:$0xff]  ;;  %v1668_v13 = vld [vmem:[%s2224_s0 + $0x34] sm:$0xf] }
  0x21   :  { %1019 = vmatpush.bf16.msra.mxu3 %v1700_v33  ;;  %978 = vmatmul.bf16.vlgmr.msra.gmra.mxu0 %v1176_v44  ;;  %v1761_v33 = vld [vmem:[%s2222_s1 + $0x2a8] sm:$0xff]  ;;  %v1767_v43 = vld [vmem:[%s2222_s1 + $0x2d8] sm:$0xff]  ;;  %v1742_v44 = vld [vmem:[%s2222_s1 + $0x210] sm:$0xff]  ;;  %v1228_v15 = vor.u32 %v1668_v13, %v1225_v14 }
  0x22   :  { %1026 = vmatpush.bf16.msrb.mxu0 %v1715_v30  ;;  %1006 = vmatmul.bf16.vlgmr.msra.gmra.mxu2 %v1184_v45  ;;  %v1754_v30 = vld [vmem:[%s2222_s1 + $0x270] sm:$0xff]  ;;  %v1775_v12 = vld [vmem:[%s2222_s1 + $0x318] sm:$0xff]  ;;  %v1772_v18 = vld [vmem:[%s2222_s1 + $0x300] sm:$0xff] }
  0x23   :  { %1054 = vmatpush.bf16.msrb.mxu2 %v1731_v31  ;;  %992 = vmatmul.bf16.vlgmr.msra.gmra.mxu1 %v1180_v48  ;;  %v1770_v31 = vld [vmem:[%s2222_s1 + $0x2f0] sm:$0xff]  ;;  %v1741_v48 = vld [vmem:[%s2222_s1 + $0x208] sm:$0xff] }
  0x24   :  { %1040 = vmatpush.bf16.msrb.mxu1 %v1723_v38  ;;  %1020 = vmatmul.bf16.vlgmr.msra.gmra.mxu3 %v1188_v49  ;;  %v1752_v38 = vld [vmem:[%s2222_s1 + $0x260] sm:$0xff]  ;;  %v1758_v45 = vld [vmem:[%s2222_s1 + $0x290] sm:$0xff]  ;;  %v1757_v49 = vld [vmem:[%s2222_s1 + $0x288] sm:$0xff] }
  0x25   :  { %1068 = vmatpush.bf16.msrb.mxu3 %v1739_v39  ;;  %v1768_v39 = vld [vmem:[%s2222_s1 + $0x2e0] sm:$0xff]  ;;  %v1223_v19 = vld [vmem:[%s2224_s0 + $0x30] sm:$0xf]  ;;  %v1675_v20 = vld [vmem:[%s2224_s0 + $0x64] sm:$0xf0] }
  0x26   :  { %1027 = vmatpush.bf16.msrb.mxu0 %v1714_v46  ;;  %v1750_v46 = vld [vmem:[%s2222_s1 + $0x250] sm:$0xff]  ;;  %v1224_v21 = vor.u32 %v1675_v20, %v1223_v19 }
  0x27   :  { %1055 = vmatpush.bf16.msrb.mxu2 %v1730_v47  ;;  %v1766_v47 = vld [vmem:[%s2222_s1 + $0x2d0] sm:$0xff] }
  0x28   :  { %1041 = vmatpush.bf16.msrb.mxu1 %v1722_v50  ;;  %v1749_v50 = vld [vmem:[%s2222_s1 + $0x248] sm:$0xff] }
  0x29   :  { %1069 = vmatpush.bf16.msrb.mxu3 %v1738_v51  ;;  %v1765_v51 = vld [vmem:[%s2222_s1 + $0x2c8] sm:$0xff] }
  0x2a   :  { %1028 = vmatpush.bf16.msrb.mxu0 %v1713_v52  ;;  %v1740_v52 = vld [vmem:[%s2222_s1 + $0x200] sm:$0xff] }
  0x2b   :  { %1056 = vmatpush.bf16.msrb.mxu2 %v1729_v53  ;;  %v1756_v53 = vld [vmem:[%s2222_s1 + $0x280] sm:$0xff] }
  0x2c   :  { %1042 = vmatpush.bf16.msrb.mxu1 %v1721_v54  ;;  %v1779_v54 = vld [vmem:[%s2222_s1 + $0x338] sm:$0xff] }
  0x2d   :  { %1070 = vmatpush.bf16.msrb.mxu3 %v1737_v55  ;;  %v1207_v55 = vld [vmem:[%s2224_s0 + $0x20] sm:$0xf] }
  0x2e   :  { %1029 = vmatpush.bf16.msrb.mxu0 %v1712_v56  ;;  %v1673_v56 = vld [vmem:[%s2224_s0 + $0x54] sm:$0xf0] }
  0x2f   :  { %1057 = vmatpush.bf16.msrb.mxu2 %v1728_v57  ;;  %v1215_v57 = vld [vmem:[%s2224_s0 + $0x28] sm:$0xf] }
  0x30   :  { %1043 = vmatpush.bf16.msrb.mxu1 %v1720_v58  ;;  %v1674_v58 = vld [vmem:[%s2224_s0 + $0x5c] sm:$0xf0] }
  0x31   :  { %1071 = vmatpush.bf16.msrb.mxu3 %v1736_v59  ;;  %v1748_v59 = vld [vmem:[%s2222_s1 + $0x240] sm:$0xff] }
  0x32   :  { %1030 = vmatpush.bf16.msrb.mxu0 %v1711_v60  ;;  %v1764_v60 = vld [vmem:[%s2222_s1 + $0x2c0] sm:$0xff] }
  0x33   :  { %1058 = vmatpush.bf16.msrb.mxu2 %v1727_v61  ;;  %v1666_v61 = vld [vmem:[%s2224_s0 + $0x24] sm:$0xf] }
  0x34   :  { %1044 = vmatpush.bf16.msrb.mxu1 %v1719_v62  ;;  %v1209_v62 = vld [vmem:[%s2224_s0 + $0x58] sm:$0xf0] }
  0x35   :  { %1072 = vmatpush.bf16.msrb.mxu3 %v1735_v63  ;;  %v1667_v63 = vld [vmem:[%s2224_s0 + $0x2c] sm:$0xf] }
  0x36   :  { %1031 = vmatpush.bf16.msrb.mxu0 %v1710_v0  ;;  %v1217_v0 = vld [vmem:[%s2224_s0 + $0x60] sm:$0xf0] }
  0x37   :  { %1059 = vmatpush.bf16.msrb.mxu2 %v1726_v1  ;;  %v1208_v1 = vor.u32 %v1673_v56, %v1207_v55 }
  0x38   :  { %1045 = vmatpush.bf16.msrb.mxu1 %v1718_v2  ;;  %v1216_v2 = vor.u32 %v1674_v58, %v1215_v57 }
  0x39   :  { %1073 = vmatpush.bf16.msrb.mxu3 %v1734_v3  ;;  %v1783_v3 = vld [vmem:[%s2222_s1 + $0x358] sm:$0xff] }
  0x3a   :  { %1032 = vmatpush.bf16.msrb.mxu0 %v1709_v4  ;;  %v1212_v4 = vor.u32 %v1666_v61, %v1209_v62 }
  0x3b   :  { %1060 = vmatpush.bf16.msrb.mxu2 %v1725_v5  ;;  %v1220_v5 = vor.u32 %v1667_v63, %v1217_v0 }
  0x3c   :  { %1046 = vmatpush.bf16.msrb.mxu1 %v1717_v6  ;;  %v1778_v6 = vld [vmem:[%s2222_s1 + $0x330] sm:$0xff] }
  0x3d   :  { %1074 = vmatpush.bf16.msrb.mxu3 %v1733_v7  ;;  %v1782_v7 = vld [vmem:[%s2222_s1 + $0x350] sm:$0xff] }
  0x3e   :  { %1033 = vmatpush.bf16.msrb.mxu0 %v1708_v8  ;;  %v1777_v8 = vld [vmem:[%s2222_s1 + $0x328] sm:$0xff] }
  0x3f   :  { %1061 = vmatpush.bf16.msrb.mxu2 %v1724_v9  ;;  %v1781_v9 = vld [vmem:[%s2222_s1 + $0x348] sm:$0xff] }
  0x40   :  { %1047 = vmatpush.bf16.msrb.mxu1 %v1716_v16  ;;  %v1774_v16 = vld [vmem:[%s2222_s1 + $0x310] sm:$0xff] }
  0x41   :  { %1075 = vmatpush.bf16.msrb.mxu3 %v1732_v17  ;;  %1034 = vmatmul.bf16.vlgmr.msrb.gmra.mxu0 %v1192_v22  ;;  %v1773_v17 = vld [vmem:[%s2222_s1 + $0x308] sm:$0xff] }
  0x42   :  { %1082 = vmatpush.bf16.msra.mxu0 %v1747_v10  ;;  %1062 = vmatmul.bf16.vlgmr.msrb.gmra.mxu2 %v1200_v23  ;;  %v1776_v10 = vld [vmem:[%s2222_s1 + $0x320] sm:$0xff] }
  0x43   :  { %1110 = vmatpush.bf16.msra.mxu2 %v1763_v11  ;;  %1048 = vmatmul.bf16.vlgmr.msrb.gmra.mxu1 %v1196_v26  ;;  %v1780_v11 = vld [vmem:[%s2222_s1 + $0x340] sm:$0xff] }
  0x44   :  { %1096 = vmatpush.bf16.msra.mxu1 %v1755_v24  ;;  %1076 = vmatmul.bf16.vlgmr.msrb.gmra.mxu3 %v1204_v27  ;;  %v1784_v27 = vld [vmem:[%s2223_s2] ss:$0 sm:$0xff] }
  0x45   :  { %1124 = vmatpush.bf16.msra.mxu3 %v1771_v25 }
  0x46   :  { %1083 = vmatpush.bf16.msra.mxu0 %v1746_v28 }
  0x47   :  { %1111 = vmatpush.bf16.msra.mxu2 %v1762_v29 }
  0x48   :  { %1097 = vmatpush.bf16.msra.mxu1 %v1754_v30 }
  0x49   :  { %1125 = vmatpush.bf16.msra.mxu3 %v1770_v31 }
  0x4a   :  { %1084 = vmatpush.bf16.msra.mxu0 %v1745_v32 }
  0x4b   :  { %1112 = vmatpush.bf16.msra.mxu2 %v1761_v33 }
  0x4c   :  { %1098 = vmatpush.bf16.msra.mxu1 %v1753_v34 }
  0x4d   :  { %1126 = vmatpush.bf16.msra.mxu3 %v1769_v35 }
  0x4e   :  { %1085 = vmatpush.bf16.msra.mxu0 %v1744_v36 }
  0x4f   :  { %1113 = vmatpush.bf16.msra.mxu2 %v1760_v37 }
  0x50   :  { %1099 = vmatpush.bf16.msra.mxu1 %v1752_v38 }
  0x51   :  { %1127 = vmatpush.bf16.msra.mxu3 %v1768_v39 }
  0x52   :  { %1086 = vmatpush.bf16.msra.mxu0 %v1743_v40 }
  0x53   :  { %1114 = vmatpush.bf16.msra.mxu2 %v1759_v41 }
  0x54   :  { %1100 = vmatpush.bf16.msra.mxu1 %v1751_v42 }
  0x55   :  { %1128 = vmatpush.bf16.msra.mxu3 %v1767_v43 }
  0x56   :  { %1087 = vmatpush.bf16.msra.mxu0 %v1742_v44 }
  0x57   :  { %1115 = vmatpush.bf16.msra.mxu2 %v1758_v45 }
  0x58   :  { %1101 = vmatpush.bf16.msra.mxu1 %v1750_v46 }
  0x59   :  { %1129 = vmatpush.bf16.msra.mxu3 %v1766_v47 }
  0x5a   :  { %1088 = vmatpush.bf16.msra.mxu0 %v1741_v48 }
  0x5b   :  { %1116 = vmatpush.bf16.msra.mxu2 %v1757_v49 }
  0x5c   :  { %1102 = vmatpush.bf16.msra.mxu1 %v1749_v50 }
  0x5d   :  { %1130 = vmatpush.bf16.msra.mxu3 %v1765_v51 }
  0x5e   :  { %1089 = vmatpush.bf16.msra.mxu0 %v1740_v52 }
  0x5f   :  { %1117 = vmatpush.bf16.msra.mxu2 %v1756_v53 }
  0x60   :  { %1103 = vmatpush.bf16.msra.mxu1 %v1748_v59 }
  0x61   :  { %1131 = vmatpush.bf16.msra.mxu3 %v1764_v60  ;;  %1090 = vmatmul.bf16.vlgmr.msra.gmra.mxu0 %v1208_v1 }
  0x62   :  { %1138 = vmatpush.bf16.msrb.mxu0 %v1779_v54  ;;  %1118 = vmatmul.bf16.vlgmr.msra.gmra.mxu2 %v1216_v2 }
  0x63   :  { %1104 = vmatmul.bf16.vlgmr.msra.gmra.mxu1 %v1212_v4 }
  0x64   :  { %1156 = vmatpush.bf16.msrb.mxu1 %v1783_v3  ;;  %1132 = vmatmul.bf16.vlgmr.msra.gmra.mxu3 %v1220_v5 }
  0x66   :  { %1139 = vmatpush.bf16.msrb.mxu0 %v1778_v6 }
  0x68   :  { %1157 = vmatpush.bf16.msrb.mxu1 %v1782_v7 }
  0x6a   :  { %1140 = vmatpush.bf16.msrb.mxu0 %v1777_v8 }
  0x6c   :  { %1158 = vmatpush.bf16.msrb.mxu1 %v1781_v9 }
  0x6e   :  { %1141 = vmatpush.bf16.msrb.mxu0 %v1776_v10 }
  0x70   :  { %1159 = vmatpush.bf16.msrb.mxu1 %v1780_v11 }
  0x72   :  { %1142 = vmatpush.bf16.msrb.mxu0 %v1775_v12 }
  0x73   :  { %1661 = vmatmul.msk.bf16.vlgmr.msrb.gmra.mxu1 %vm966_vm0, %v1228_v15 }
  0x76   :  { %1143 = vmatpush.bf16.msrb.mxu0 %v1774_v16 }
  0x7a   :  { %1144 = vmatpush.bf16.msrb.mxu0 %v1773_v17 }
  0x7e   :  { %1145 = vmatpush.bf16.msrb.mxu0 %v1772_v18 }
  0x81   :  { %1146 = vmatmul.bf16.vlgmr.msrb.gmra.mxu0 %v1224_v21 }
  0x9e   :  { %v979_v22 = vpop.f32.mrf.mxu0 }
  0x9f   :  { %v980_v29 = vadd.f32 %v1784_v27, %v979_v22 }
  0xa0   :  { %v993_v23 = vpop.f32.mrf.mxu1 }
  0xa1   :  { %v994_v31 = vadd.f32 %v993_v23, %v980_v29 }
  0xa5   :  { %v1007_v24 = vpop.f32.mrf.mxu2 }
  0xa6   :  { %v981_v25 = vpop.f32.mrf.mxu0  ;;  %v1008_v35 = vadd.f32 %v1007_v24, %v994_v31 }
  0xa7   :  { %v1021_v28 = vpop.f32.mrf.mxu3  ;;  %v982_v36 = vadd.f32 %v1784_v27, %v981_v25 }
  0xa8   :  { %v995_v26 = vpop.f32.mrf.mxu1  ;;  %v1022_v37 = vadd.f32 %v1021_v28, %v1008_v35 }
  0xa9   :  { %v996_v41 = vadd.f32 %v995_v26, %v982_v36 }
  0xad   :  { %v1009_v30 = vpop.f32.mrf.mxu2 }
  0xae   :  { %v1010_v44 = vadd.f32 %v1009_v30, %v996_v41 }
  0xaf   :  { %v1023_v34 = vpop.f32.mrf.mxu3 }
  0xb0   :  { %v1024_v49 = vadd.f32 %v1023_v34, %v1010_v44 }
  0xbe   :  { %v1035_v32 = vpop.f32.mrf.mxu0 }
  0xbf   :  { %v1036_v42 = vadd.f32 %v1035_v32, %v1022_v37 }
  0xc0   :  { %v1049_v33 = vpop.f32.mrf.mxu1 }
  0xc1   :  { %v1050_v45 = vadd.f32 %v1049_v33, %v1036_v42 }
  0xc5   :  { %v1063_v38 = vpop.f32.mrf.mxu2 }
  0xc6   :  { %v1037_v39 = vpop.f32.mrf.mxu0  ;;  %v1064_v50 = vadd.f32 %v1063_v38, %v1050_v45 }
  0xc7   :  { %v1077_v43 = vpop.f32.mrf.mxu3  ;;  %v1038_v51 = vadd.f32 %v1037_v39, %v1024_v49 }
  0xc8   :  { %v1051_v40 = vpop.f32.mrf.mxu1  ;;  %v1078_v53 = vadd.f32 %v1077_v43, %v1064_v50 }
  0xc9   :  { %v1052_v54 = vadd.f32 %v1051_v40, %v1038_v51 }
  0xcd   :  { %v1065_v46 = vpop.f32.mrf.mxu2 }
  0xce   :  { %v1066_v57 = vadd.f32 %v1065_v46, %v1052_v54 }
  0xcf   :  { %v1079_v52 = vpop.f32.mrf.mxu3 }
  0xd0   :  { %v1080_v62 = vadd.f32 %v1079_v52, %v1066_v57 }
  0xde   :  { %v1091_v47 = vpop.f32.mrf.mxu0 }
  0xdf   :  { %v1092_v55 = vadd.f32 %v1091_v47, %v1078_v53 }
  0xe0   :  { %v1105_v48 = vpop.f32.mrf.mxu1 }
  0xe1   :  { %v1106_v60 = vadd.f32 %v1105_v48, %v1092_v55 }
  0xe5   :  { %v1119_v56 = vpop.f32.mrf.mxu2 }
  0xe6   :  { %v1093_v58 = vpop.f32.mrf.mxu0  ;;  %v1120_v63 = vadd.f32 %v1119_v56, %v1106_v60 }
  0xe7   :  { %v1133_v61 = vpop.f32.mrf.mxu3  ;;  %v1094_v0 = vadd.f32 %v1093_v58, %v1080_v62 }
  0xe8   :  { %v1107_v59 = vpop.f32.mrf.mxu1  ;;  %v1134_v1 = vadd.f32 %v1133_v61, %v1120_v63 }
  0xe9   :  { %v1108_v5 = vadd.f32 %v1107_v59, %v1094_v0 }
  0xed   :  { %v1121_v2 = vpop.f32.mrf.mxu2 }
  0xee   :  { %v1122_v7 = vadd.f32 %v1121_v2, %v1108_v5 }
  0xef   :  { %v1135_v9 = vpop.f32.mrf.mxu3 }
  0xf0   :  { %v1161_v3 = vpop.f32.mrf.mxu1  ;;  %v1136_v10 = vadd.f32 %v1135_v9, %v1122_v7 }
  0xf8   :  { %v1163_v13 = vpop.f32.mrf.mxu1 }
  0xfe   :  { %v1147_v4 = vpop.f32.mrf.mxu0 }
  0xff   :  { %v1148_v6 = vadd.f32 %v1147_v4, %v1134_v1 }
 0x101   :  { %v1162_v8 = vadd.f32 %v1161_v3, %v1148_v6 }
 0x103   :  { %1167 = vst.msk [vmem:[%s2225_s3] sm:$0xff] %vm1166_vm1, %v1162_v8 }
 0x106   :  { %v1149_v11 = vpop.f32.mrf.mxu0 }
 0x107   :  { %v1150_v12 = vadd.f32 %v1149_v11, %v1136_v10 }
 0x109   :  { %v1164_v14 = vadd.f32 %v1163_v13, %v1150_v12 }
 0x10b   :  { %1168 = vst.msk [vmem:[%s2225_s3 + $0x8] sm:$0xff] %vm1166_vm1, %v1164_v14 }

</bundles_post_ra>
